<compile_context>
chip_gen: v5e
topology: v5e:2x2
jax: 0.10.0
libtpu: 0.0.40
codegen_flags: <defaults>
</compile_context>

<pallas_src>
import numpy as np
import jax
import jax.numpy as jnp
from jax.experimental import pallas as pl
from jax.experimental.pallas import tpu as pltpu


def _round_up(x: int, m: int) -> int:
    return ((x + m - 1) // m) * m


def _bilinear_matrix(in_size: int, out_size: int, ratio: float) -> np.ndarray:
    """Row-interpolation matrix matching torch upsample_bilinear2d,
    align_corners=False:  src = ratio * (dst + 0.5) - 0.5 (clamped to >= 0)."""
    o = np.arange(out_size, dtype=np.float64)
    src = ratio * (o + 0.5) - 0.5
    src = np.maximum(src, 0.0)
    i0 = np.floor(src).astype(np.int64)
    i0 = np.minimum(i0, in_size - 1)
    i1 = np.minimum(i0 + 1, in_size - 1)
    lam1 = src - i0
    lam0 = 1.0 - lam1
    W = np.zeros((out_size, in_size), dtype=np.float32)
    W[np.arange(out_size), i0] += lam0.astype(np.float32)
    W[np.arange(out_size), i1] += lam1.astype(np.float32)
    return W


def _downsample_kernel(wh_ref, wwt_ref, x_ref, o_ref):
    # wh_ref : (h_out, h)          -- shared bilinear row matrix
    # wwt_ref: (w, w_out_pad)      -- shared bilinear col matrix^T, zero-padded
    # x_ref  : (P, h, w)           -- P planes per grid step
    # o_ref  : (P, h_out, w_out_pad)
    p, h, w = x_ref.shape
    w_out_pad = wwt_ref.shape[1]
    cdt = wwt_ref.dtype

    x = x_ref[...].astype(cdt)
    # Width contraction as a single flattened MXU matmul with M = P*h.
    xw = jnp.dot(x.reshape(p * h, w), wwt_ref[...],
                 preferred_element_type=jnp.float32)          # (P*h, w_out_pad)
    xw = xw.reshape(p, h, w_out_pad).astype(cdt)
    # Height contraction, batched over the P planes (f32 accumulation).
    y = jnp.einsum('oh,phw->pow', wh_ref[...], xw,
                   preferred_element_type=jnp.float32)        # (P, h_out, w_out_pad)
    o_ref[...] = y.astype(o_ref.dtype)


def _choose_planes_per_step(n: int, h: int, w: int, h_out: int, w_out_pad: int,
                            itemsize: int, budget_bytes: int = 12 << 20) -> int:
    # Keep (input block + padded output block) under ~12 MiB so the
    # double-buffered pipeline stays well within 48 MiB VMEM on every chip.
    per_plane = (h * w + h_out * w_out_pad) * itemsize
    p = max(1, budget_bytes // per_plane)
    return int(min(p, n, 256))


def feature_extractor_forward(x: jax.Array, downscale: int = 4,
                              compute_dtype=jnp.float32,
                              planes_per_step: int | None = None) -> jax.Array:
    """x: [b, f, 3, h, w] -> [b, f, 3, floor(h/downscale), floor(w/downscale)]."""
    b, f, c, h, w = x.shape
    # torch.nn.Upsample(scale_factor=1/downscale): out = floor(in/downscale),
    # interpolation ratio = downscale (the provided scale is used directly).
    h_out = int(np.floor(h / downscale))
    w_out = int(np.floor(w / downscale))
    assert h_out >= 1 and w_out >= 1

    # Lane-dense output: pad the output width up to a multiple of 128 by
    # zero-padding the columns of Ww^T; slice the padding off afterwards.
    w_out_pad = max(128, _round_up(w_out, 128))

    wh = jnp.asarray(_bilinear_matrix(h, h_out, float(downscale)),
                     dtype=compute_dtype)                       # (h_out, h)
    wwt_np = _bilinear_matrix(w, w_out, float(downscale)).T      # (w, w_out)
    wwt_np = np.pad(wwt_np, ((0, 0), (0, w_out_pad - w_out)))
    wwt = jnp.asarray(wwt_np, dtype=compute_dtype)               # (w, w_out_pad)

    n = b * f * c
    xf = x.reshape(n, h, w)

    itemsize = int(jnp.dtype(x.dtype).itemsize)
    if planes_per_step is None:
        p = _choose_planes_per_step(n, h, w, h_out, w_out_pad, max(itemsize, 4))
    else:
        p = int(min(planes_per_step, n))
    n_pad = _round_up(n, p)
    if n_pad != n:
        xf = jnp.pad(xf, ((0, n_pad - n), (0, 0), (0, 0)))

    grid = (n_pad // p,)
    flops = 2 * n * (h * w * w_out + h_out * h * w_out)
    bytes_accessed = (n * (h * w + h_out * w_out) * itemsize
                      + (wh.size + wwt.size) * int(jnp.dtype(compute_dtype).itemsize))

    out = pl.pallas_call(
        _downsample_kernel,
        out_shape=jax.ShapeDtypeStruct((n_pad, h_out, w_out_pad), x.dtype),
        grid=grid,
        in_specs=[
            pl.BlockSpec((h_out, h), lambda i: (0, 0)),          # Wh   (shared)
            pl.BlockSpec((w, w_out_pad), lambda i: (0, 0)),      # Ww^T (shared, padded)
            pl.BlockSpec((p, h, w), lambda i: (i, 0, 0)),        # P planes / step
        ],
        out_specs=pl.BlockSpec((p, h_out, w_out_pad), lambda i: (i, 0, 0)),
        compiler_params=pltpu.CompilerParams(
            dimension_semantics=("parallel",),
            vmem_limit_bytes=48 * 1024 * 1024,
        ),
        cost_estimate=pl.CostEstimate(
            flops=flops, transcendentals=0, bytes_accessed=bytes_accessed),
    )(wh, wwt, xf)

    return out[:n, :, :w_out].reshape(b, f, c, h_out, w_out)


if __name__ == "__main__":
    key = jax.random.PRNGKey(0)
    b, f, c, h, w = 2, 2, 3, 16, 16
    downscale = 4
    x = jax.random.normal(key, (b, f, c, h, w), dtype=jnp.float32)

    # Independent reference: for integer downscale=4 with divisible sizes,
    # align_corners=False bilinear reduces to averaging the central 2x2 pixels
    # of each 4x4 block.
    xn = np.asarray(x)
    ref = 0.25 * (
        xn[..., 1::4, 1::4] + xn[..., 1::4, 2::4]
        + xn[..., 2::4, 1::4] + xn[..., 2::4, 2::4]
    )

    # 1) default plane batching (P = n, single grid step)
    y = jax.block_until_ready(feature_extractor_forward(x, downscale=downscale))
    assert y.shape == (b, f, c, h // downscale, w // downscale), y.shape
    np.testing.assert_allclose(np.asarray(y), ref, rtol=1e-5, atol=1e-5)

    # 2) forced smaller P to exercise multi-step grid + plane padding
    y2 = jax.block_until_ready(
        feature_extractor_forward(x, downscale=downscale, planes_per_step=5))
    np.testing.assert_allclose(np.asarray(y2), ref, rtol=1e-5, atol=1e-5)

    print("KERNEL_OK")
</pallas_src>

<mosaic_0001>
module attributes {stable_mosaic.version = 11 : i64} {
  func.func @_downsample_kernel(%arg0: i32, %arg1: memref<4x16xf32, #tpu.memory_space<vmem>>, %arg2: memref<16x128xf32, #tpu.memory_space<vmem>>, %arg3: memref<12x16x16xf32, #tpu.memory_space<vmem>>, %arg4: memref<12x4x128xf32, #tpu.memory_space<vmem>>) attributes {dimension_semantics = [#tpu.dimension_semantics<parallel>], iteration_bounds = array<i64: 1>, scalar_prefetch = 0 : i64, scratch_operands = 0 : i64, tpu.core_type = #tpu.core_type<tc>, window_params = [{pipeline_mode = #tpu.pipeline_mode<synchronous>, transform_indices = @transform_0, window_bounds = array<i64: 4, 16>}, {pipeline_mode = #tpu.pipeline_mode<synchronous>, transform_indices = @transform_1, window_bounds = array<i64: 16, 128>}, {transform_indices = @transform_2, window_bounds = array<i64: 12, 16, 16>}, {transform_indices = @transform_3, window_bounds = array<i64: 12, 4, 128>}]} {
    %c0 = arith.constant 0 : index
    %c0_0 = arith.constant 0 : index
    %c0_1 = arith.constant 0 : index
    %0 = vector.load %arg3[%c0, %c0_0, %c0_1] : memref<12x16x16xf32, #tpu.memory_space<vmem>>, vector<12x16x16xf32>
    %1 = vector.shape_cast %0 : vector<12x16x16xf32> to vector<192x16xf32>
    %c0_2 = arith.constant 0 : index
    %c0_3 = arith.constant 0 : index
    %2 = vector.load %arg2[%c0_2, %c0_3] : memref<16x128xf32, #tpu.memory_space<vmem>>, vector<16x128xf32>
    %cst = arith.constant dense<0.000000e+00> : vector<192x128xf32>
    %3 = tpu.matmul %1, %2, %cst {dimension_numbers = #tpu.dot_dimension_numbers<[1], [0], [0], [1], [0, 0, 1, 1], [], []>} : vector<192x16xf32>, vector<16x128xf32>, vector<192x128xf32> -> vector<192x128xf32>
    %4 = vector.shape_cast %3 : vector<192x128xf32> to vector<12x16x128xf32>
    %c0_4 = arith.constant 0 : index
    %c0_5 = arith.constant 0 : index
    %5 = vector.load %arg1[%c0_4, %c0_5] : memref<4x16xf32, #tpu.memory_space<vmem>>, vector<4x16xf32>
    "tpu.trace_start"() <{level = 10 : i32, message = "oh,phw->pow"}> : () -> ()
    %cst_6 = arith.constant dense<0.000000e+00> : vector<12x128x4xf32>
    %6 = tpu.matmul %4, %5, %cst_6 {dimension_numbers = #tpu.dot_dimension_numbers<[1], [1], [0, 2], [0], [0, 0, 0, 2, 1, 0], [], []>} : vector<12x16x128xf32>, vector<4x16xf32>, vector<12x128x4xf32> -> vector<12x128x4xf32>
    %7 = tpu.transpose %6, [0, 2, 1] : vector<12x128x4xf32> -> vector<12x4x128xf32>
    "tpu.trace_stop"() : () -> ()
    %c0_7 = arith.constant 0 : index
    %c0_8 = arith.constant 0 : index
    %c0_9 = arith.constant 0 : index
    %8 = vector.load %arg4[%c0_7, %c0_8, %c0_9] : memref<12x4x128xf32, #tpu.memory_space<vmem>>, vector<12x4x128xf32>
    tpu.vector_store %arg4[%c0_7, %c0_8, %c0_9], %7 {strides = array<i32>} : memref<12x4x128xf32, #tpu.memory_space<vmem>>, vector<12x4x128xf32>,
    return
  }
  func.func @transform_0(%arg0: i32) -> (i32, i32) {
    %c0_i32 = arith.constant 0 : i32
    %c0_i32_0 = arith.constant 0 : i32
    %c0_i32_1 = arith.constant 0 : i32
    return %c0_i32, %c0_i32_0 : i32, i32
  }
  func.func @transform_1(%arg0: i32) -> (i32, i32) {
    %c0_i32 = arith.constant 0 : i32
    %c0_i32_0 = arith.constant 0 : i32
    %c0_i32_1 = arith.constant 0 : i32
    return %c0_i32, %c0_i32_0 : i32, i32
  }
  func.func @transform_2(%arg0: i32) -> (i32, i32, i32) {
    %c0_i32 = arith.constant 0 : i32
    %c0_i32_0 = arith.constant 0 : i32
    %c0_i32_1 = arith.constant 0 : i32
    return %arg0, %c0_i32, %c0_i32_0 : i32, i32, i32
  }
  func.func @transform_3(%arg0: i32) -> (i32, i32, i32) {
    %c0_i32 = arith.constant 0 : i32
    %c0_i32_0 = arith.constant 0 : i32
    %c0_i32_1 = arith.constant 0 : i32
    return %arg0, %c0_i32, %c0_i32_0 : i32, i32, i32
  }
}

</mosaic_0001>

<bundles_post_ra>
// kernel: tpu_custom_call.1
= control target key start
LH: loop header
LB: loop body
LE: loop exit
PB: predicated region body
PF: predicated region fallthrough
CT: control target
= control target key end

     0   :  { %8 = vsyncpa [#allocation3], 0  ;;  %s3406_s0 = inlined_call_operand.hbm [shape: f32[4,16], index: 0, kind: input, shape index: {}]   ;;  %s3407_s1 = inlined_call_operand.hbm [shape: f32[16,128], index: 1, kind: input, shape index: {}]   ;;  %s3408_s2 = inlined_call_operand.hbm [shape: f32[12,16,16], index: 2, kind: input, shape index: {}]   ;;  %s3409_s3 = inlined_call_operand.hbm [shape: f32[12,4,128], index: 3, kind: output, shape index: {}]  }
   0x1   :  { %9 = vsyncpa [#allocation6], 0  ;;  %s26_s14 = sshll.u32 %s3407_s1, 4  ;;  %s27_s14 = int_to_ptr.hbm [resolvable:$true] %s26_s14 }
   0x2   :  { %10 = vsyncpa [#allocation4], 0  ;;  %s2552_s15 = smov [#allocation5]   ;;  %s16_s19 = sshll.u32 %s3406_s0, 4  ;;  %s17_s19 = int_to_ptr.hbm [resolvable:$true] %s16_s19 }
   0x3   :  { %s28_s16 = sshll.u32 %s2552_s15, 4  ;;  %s2553_s20 = smov 128   ;;  %s29_s16 = int_to_ptr.vmem [resolvable:$true] %s28_s16 }
   0x4   :  { %s2554_s21 = smov 8   ;;  %s2555_s22 = smov [#allocation2]  }
   0x5   :  { %34 = dma.hbm_to_vmem [thread:$0]  %s27_s14, 256, %s29_s16, [#allocation6], %s2553_s20, %s2553_s20, %s2554_s21  }
   0x6   :  { %s18_s23 = sshll.u32 %s2555_s22, 4  ;;  %s39_s26 = sshll.u32 %s3408_s2, 4  ;;  %s19_s23 = int_to_ptr.vmem [resolvable:$true] %s18_s23  ;;  %s40_s26 = int_to_ptr.hbm [resolvable:$true] %s39_s26 }
   0x7   :  { %21 = dma.hbm_to_vmem [thread:$0]  %s17_s19, 64, %s19_s23, [#allocation3]  }
   0x8   :  { %s2556_s1 = smov [#allocation7]  }
   0x9   :  { %s41_s27 = sshll.u32 %s2556_s1, 4  ;;  %s42_s27 = int_to_ptr.vmem [resolvable:$true] %s41_s27 }
   0xa   :  { %47 = dma.hbm_to_vmem [thread:$0]  %s40_s26, 3072, %s42_s27, [#allocation6], %s2553_s20, %s2553_s20, %s2554_s21  }
   0xb   :  { %2546 = dma.done.wait [#allocation3], 64  }
   0xc   :  { %2547 = vsyncadd [#allocation3], 4294967232 }
   0xd   :  { %2548 = dma.done.wait [#allocation6], 3328  }
   0xe   :  { %2549 = vsyncadd [#allocation6], 4294963968  ;;  %v85_v0 = vld [vmem:[#allocation5 + $0x8] sm:$0xff]  ;;  %v84_v1 = vld [vmem:[#allocation5] sm:$0xff]  ;;  %vm86_vm0 = vcmask 130048   ;;  %s2557_s0 = smov [#allocation8]  }
   0xf   :  { %173 = vmatpush.msra.mxu0 %v85_v0  ;;  %v60_v2 = vld [vmem:[#allocation7] sm:$0xff]  ;;  %v61_v3 = vld [vmem:[#allocation7 + $0x8] sm:$0xff]  ;;  %v62_v4 = vld [vmem:[#allocation7 + $0x10] sm:$0xff]  ;;  %s2205_s2 = sshll.u32 %s2557_s0, 4  ;;  %s2207_s30 = sshll.u32 %s3409_s3, 4  ;;  %s2206_s2 = int_to_ptr.vmem [resolvable:$true] %s2205_s2  ;;  %s2208_s30 = int_to_ptr.hbm [resolvable:$true] %s2207_s30 }
  0x10   :  { %v63_v5 = vld [vmem:[#allocation7 + $0x18] sm:$0xff]  ;;  %v64_v6 = vld [vmem:[#allocation7 + $0x20] sm:$0xff]  ;;  %v65_v7 = vld [vmem:[#allocation7 + $0x28] sm:$0xff]  ;;  %s2558_s4 = smov 64   ;;  %s2559_s5 = smov 4  }
  0x11   :  { %174 = vmatpush.msra.mxu0 %v84_v1  ;;  %v66_v8 = vld [vmem:[#allocation7 + $0x30] sm:$0xff]  ;;  %v67_v9 = vld [vmem:[#allocation7 + $0x38] sm:$0xff]  ;;  %v68_v10 = vld [vmem:[#allocation7 + $0x40] sm:$0xff] }
  0x12   :  { %2221 = vmatmul.msk.f32.vlgmr.msra.gmra.mxu0 %vm86_vm0, %v60_v2  ;;  %v69_v11 = vld [vmem:[#allocation7 + $0x48] sm:$0xff]  ;;  %v70_v13 = vld [vmem:[#allocation7 + $0x50] sm:$0xff]  ;;  %v71_v15 = vld [vmem:[#allocation7 + $0x58] sm:$0xff] }
  0x13   :  { %v72_v16 = vld [vmem:[#allocation7 + $0x60] sm:$0xff]  ;;  %v73_v18 = vld [vmem:[#allocation7 + $0x68] sm:$0xff]  ;;  %v74_v20 = vld [vmem:[#allocation7 + $0x70] sm:$0xff] }
  0x14   :  { %v75_v22 = vld [vmem:[#allocation7 + $0x78] sm:$0xff]  ;;  %v76_v24 = vld [vmem:[#allocation7 + $0x80] sm:$0xff]  ;;  %v77_v25 = vld [vmem:[#allocation7 + $0x88] sm:$0xff] }
  0x15   :  { %v78_v26 = vld [vmem:[#allocation7 + $0x90] sm:$0xff]  ;;  %v79_v27 = vld [vmem:[#allocation7 + $0x98] sm:$0xff]  ;;  %v80_v28 = vld [vmem:[#allocation7 + $0xa0] sm:$0xff] }
  0x16   :  { %v81_v30 = vld [vmem:[#allocation7 + $0xa8] sm:$0xff]  ;;  %v82_v32 = vld [vmem:[#allocation7 + $0xb0] sm:$0xff]  ;;  %v83_v34 = vld [vmem:[#allocation7 + $0xb8] sm:$0xff] }
  0x17   :  { %v248_v35 = vld [vmem:[#allocation2] sm:$0xf] }
  0x18   :  { %2438 = vmatpush.xpose.msk.msra.mxu1 %vm86_vm0, %v248_v35  ;;  %2245 = vmatpush.xpose.msk.msrb.mxu0 %vm86_vm0, %v248_v35 }
  0x19   :  { %2439 = vmatpush.xpose.msk.msra.mxu2 %vm86_vm0, %v248_v35  ;;  %2440 = vmatpush.xpose.msk.msra.mxu3 %vm86_vm0, %v248_v35 }
  0x1a   :  { %2222 = vmatmul.msk.f32.gmra.mxu0 %vm86_vm0, %v61_v3 }
  0x22   :  { %2223 = vmatmul.msk.f32.gmra.mxu0 %vm86_vm0, %v62_v4 }
  0x2a   :  { %2224 = vmatmul.msk.f32.gmra.mxu0 %vm86_vm0, %v63_v5 }
  0x32   :  { %2225 = vmatmul.msk.f32.gmra.mxu0 %vm86_vm0, %v64_v6 }
  0x3a   :  { %2226 = vmatmul.msk.f32.gmra.mxu0 %vm86_vm0, %v65_v7 }
  0x42   :  { %2227 = vmatmul.msk.f32.gmra.mxu0 %vm86_vm0, %v66_v8 }
  0x4a   :  { %2228 = vmatmul.msk.f32.gmra.mxu0 %vm86_vm0, %v67_v9 }
  0x52   :  { %2229 = vmatmul.msk.f32.gmra.mxu0 %vm86_vm0, %v68_v10 }
  0x5a   :  { %2230 = vmatmul.msk.f32.gmra.mxu0 %vm86_vm0, %v69_v11 }
  0x62   :  { %2231 = vmatmul.msk.f32.gmra.mxu0 %vm86_vm0, %v70_v13 }
  0x6a   :  { %2232 = vmatmul.msk.f32.gmra.mxu0 %vm86_vm0, %v71_v15 }
  0x72   :  { %2233 = vmatmul.msk.f32.gmra.mxu0 %vm86_vm0, %v72_v16 }
  0x7a   :  { %2234 = vmatmul.msk.f32.gmra.mxu0 %vm86_vm0, %v73_v18 }
  0x82   :  { %2235 = vmatmul.msk.f32.gmra.mxu0 %vm86_vm0, %v74_v20 }
  0x8a   :  { %2236 = vmatmul.msk.f32.gmra.mxu0 %vm86_vm0, %v75_v22 }
  0x8f   :  { %v176_v12 = vpop.f32.mrf.mxu0 }
  0x90   :  { %249 = vxpose.xlu0.b32.start [1/2] (short) %v176_v12, 128 }
  0x92   :  { %2237 = vmatmul.msk.f32.gmra.mxu0 %vm86_vm0, %v76_v24 }
  0x97   :  { %v179_v14 = vpop.f32.mrf.mxu0 }
  0x98   :  { %250 = vxpose.xlu0.b32.end [2/2] (short) %v179_v14, 128 }
  0x9a   :  { %2238 = vmatmul.msk.f32.gmra.mxu0 %vm86_vm0, %v77_v25 }
  0x9f   :  { %v182_v17 = vpop.f32.mrf.mxu0 }
  0xa0   :  { %281 = vxpose.xlu1.b32.start [1/2] (short) %v182_v17, 128 }
  0xa2   :  { %2239 = vmatmul.msk.f32.gmra.mxu0 %vm86_vm0, %v78_v26 }
  0xa7   :  { %v185_v19 = vpop.f32.mrf.mxu0 }
  0xa8   :  { %282 = vxpose.xlu1.b32.end [2/2] (short) %v185_v19, 128 }
  0xaa   :  { %2240 = vmatmul.msk.f32.gmra.mxu0 %vm86_vm0, %v79_v27 }
  0xaf   :  { %v188_v21 = vpop.f32.mrf.mxu0 }
  0xb0   :  { %313 = vxpose.xlu2.b32.start [1/2] (short) %v188_v21, 128 }
  0xb2   :  { %2241 = vmatmul.msk.f32.gmra.mxu0 %vm86_vm0, %v80_v28 }
  0xb7   :  { %v191_v23 = vpop.f32.mrf.mxu0 }
  0xb8   :  { %314 = vxpose.xlu2.b32.end [2/2] (short) %v191_v23, 128 }
  0xba   :  { %2242 = vmatmul.msk.f32.gmra.mxu0 %vm86_vm0, %v81_v30 }
  0xbf   :  { %v194_v29 = vpop.f32.mrf.mxu0 }
  0xc2   :  { %2243 = vmatmul.msk.f32.gmra.mxu0 %vm86_vm0, %v82_v32 }
  0xc7   :  { %v197_v31 = vpop.f32.mrf.mxu0 }
  0xca   :  { %2244 = vmatmul.msk.f32.gmra.mxu0 %vm86_vm0, %v83_v34 }
  0xcf   :  { %v200_v33 = vpop.f32.mrf.mxu0 }
  0xd7   :  { %v203_v36 = vpop.f32.mrf.mxu0 }
  0xdf   :  { %v206_v37 = vpop.f32.mrf.mxu0 }
  0xe7   :  { %v209_v39 = vpop.f32.mrf.mxu0 }
  0xef   :  { %v212_v58 = vpop.f32.mrf.mxu0 }
  0xf7   :  { %v215_v62 = vpop.f32.mrf.mxu0 }
  0xff   :  { %v218_v2 = vpop.f32.mrf.mxu0 }
 0x107   :  { %v221_v7 = vpop.f32.mrf.mxu0 }
 0x10f   :  { %v224_v13 = vpop.f32.mrf.mxu0 }
 0x110   :  { %345 = vxpose.xlu0.b32.start [1/2] (short) %v194_v29, 128 }
 0x117   :  { %v227_v17 = vpop.f32.mrf.mxu0 }
 0x118   :  { %346 = vxpose.xlu0.b32.end [2/2] (short) %v197_v31, 128 }
 0x11f   :  { %v2682_v21 = vpop.f32.mrf.mxu0 }
 0x120   :  { %377 = vxpose.xlu1.b32.start [1/2] (short) %v200_v33, 128 }
 0x127   :  { %v2691_v26 = vpop.f32.mrf.mxu0 }
 0x128   :  { %378 = vxpose.xlu1.b32.end [2/2] (short) %v203_v36, 128 }
 0x12f   :  { %v2705_v32 = vpop.f32.mrf.mxu0 }
 0x130   :  { %409 = vxpose.xlu2.b32.start [1/2] (short) %v206_v37, 128 }
 0x134   :  { %v265_v38 = vpop.trf.xlu0 }
 0x135   :  { %2246 = vmatmul.msk.f32.vlgmr.msrb.gmra.mxu0 %vm86_vm0, %v265_v38 }
 0x137   :  { %v2715_v35 = vpop.f32.mrf.mxu0 }
 0x138   :  { %410 = vxpose.xlu2.b32.end [2/2] (short) %v209_v39, 128 }
 0x13c   :  { %v266_v40 = vpop.trf.xlu0 }
 0x13d   :  { %2247 = vmatmul.msk.f32.gmra.mxu0 %vm86_vm0, %v266_v40 }
 0x13f   :  { %v2727_v39 = vpop.f32.mrf.mxu0 }
 0x144   :  { %v2619_v41 = vpop.trf.xlu1  ;;  %v267_v42 = vpop.trf.xlu0 }
 0x145   :  { %2248 = vmatmul.msk.f32.gmra.mxu0 %vm86_vm0, %v267_v42 }
 0x147   :  { %v2737_v42 = vpop.f32.mrf.mxu0 }
 0x149   :  { %v2622_v43 = vpop.trf.xlu2 }
 0x14c   :  { %v2624_v44 = vpop.trf.xlu1  ;;  %v268_v45 = vpop.trf.xlu0 }
 0x14d   :  { %2249 = vmatmul.msk.f32.gmra.mxu0 %vm86_vm0, %v268_v45 }
 0x151   :  { %v2627_v46 = vpop.trf.xlu2 }
 0x154   :  { %v2629_v47 = vpop.trf.xlu1  ;;  %v269_v48 = vpop.trf.xlu0 }
 0x155   :  { %2250 = vmatmul.msk.f32.gmra.mxu0 %vm86_vm0, %v269_v48 }
 0x159   :  { %v2632_v49 = vpop.trf.xlu2 }
 0x15c   :  { %v2634_v50 = vpop.trf.xlu1  ;;  %v270_v51 = vpop.trf.xlu0 }
 0x15d   :  { %2251 = vmatmul.msk.f32.gmra.mxu0 %vm86_vm0, %v270_v51 }
 0x161   :  { %v2637_v52 = vpop.trf.xlu2 }
 0x164   :  { %v2639_v53 = vpop.trf.xlu1  ;;  %v271_v54 = vpop.trf.xlu0 }
 0x165   :  { %2252 = vmatmul.msk.f32.gmra.mxu0 %vm86_vm0, %v271_v54 }
 0x169   :  { %v2642_v55 = vpop.trf.xlu2 }
 0x16c   :  { %v2644_v56 = vpop.trf.xlu1  ;;  %v272_v57 = vpop.trf.xlu0 }
 0x16d   :  { %2253 = vmatmul.msk.f32.gmra.mxu0 %vm86_vm0, %v272_v57 }
 0x171   :  { %v2647_v59 = vpop.trf.xlu2 }
 0x174   :  { %v2649_v60 = vpop.trf.xlu1  ;;  %v273_v61 = vpop.trf.xlu0 }
 0x175   :  { %2254 = vmatmul.msk.f32.gmra.mxu0 %vm86_vm0, %v273_v61 }
 0x179   :  { %v2652_v63 = vpop.trf.xlu2 }
 0x17c   :  { %v2654_v0 = vpop.trf.xlu1  ;;  %v274_v1 = vpop.trf.xlu0 }
 0x17d   :  { %2255 = vmatmul.msk.f32.gmra.mxu0 %vm86_vm0, %v274_v1 }
 0x181   :  { %v2657_v3 = vpop.trf.xlu2 }
 0x184   :  { %v2659_v4 = vpop.trf.xlu1  ;;  %v275_v5 = vpop.trf.xlu0 }
 0x185   :  { %2256 = vmatmul.msk.f32.gmra.mxu0 %vm86_vm0, %v275_v5 }
 0x189   :  { %v2662_v6 = vpop.trf.xlu2 }
 0x18c   :  { %v2664_v8 = vpop.trf.xlu1  ;;  %v276_v9 = vpop.trf.xlu0 }
 0x18d   :  { %2257 = vmatmul.msk.f32.gmra.mxu0 %vm86_vm0, %v276_v9 }
 0x190   :  { %441 = vxpose.xlu0.b32.start [1/2] (short) %v212_v58, 128 }
 0x191   :  { %v2667_v10 = vpop.trf.xlu2 }
 0x194   :  { %v2669_v11 = vpop.trf.xlu1  ;;  %v277_v12 = vpop.trf.xlu0 }
 0x195   :  { %2258 = vmatmul.msk.f32.gmra.mxu0 %vm86_vm0, %v277_v12 }
 0x198   :  { %442 = vxpose.xlu0.b32.end [2/2] (short) %v215_v62, 128 }
 0x199   :  { %v2672_v14 = vpop.trf.xlu2 }
 0x19c   :  { %v2674_v15 = vpop.trf.xlu1  ;;  %v278_v16 = vpop.trf.xlu0 }
 0x19d   :  { %2259 = vmatmul.msk.f32.gmra.mxu0 %vm86_vm0, %v278_v16 }
 0x1a0   :  { %473 = vxpose.xlu1.b32.start [1/2] (short) %v218_v2, 128 }
 0x1a1   :  { %v2677_v18 = vpop.trf.xlu2 }
 0x1a4   :  { %v2679_v19 = vpop.trf.xlu1  ;;  %v279_v20 = vpop.trf.xlu0 }
 0x1a5   :  { %2260 = vmatmul.msk.f32.gmra.mxu0 %vm86_vm0, %v279_v20 }
 0x1a8   :  { %474 = vxpose.xlu1.b32.end [2/2] (short) %v221_v7, 128 }
 0x1a9   :  { %v2684_v22 = vpop.trf.xlu2 }
 0x1ac   :  { %v2686_v23 = vpop.trf.xlu1  ;;  %v280_v24 = vpop.trf.xlu0 }
 0x1ad   :  { %2261 = vmatmul.msk.f32.gmra.mxu0 %vm86_vm0, %v280_v24 }
 0x1b0   :  { %505 = vxpose.xlu2.b32.start [1/2] (short) %v224_v13, 128 }
 0x1b1   :  { %v2689_v25 = vpop.trf.xlu2 }
 0x1b4   :  { %v311_v27 = vpop.trf.xlu1  ;;  %v2693_v28 = vpop.trf.xlu0 }
 0x1b5   :  { %2276 = vmatmul.msk.f32.vlgmr.msra.gmra.mxu1 %vm86_vm0, %v311_v27  ;;  %2262 = vmatmul.msk.f32.gmra.mxu0 %vm86_vm0, %v2619_v41 }
 0x1b8   :  { %506 = vxpose.xlu2.b32.end [2/2] (short) %v227_v17, 128 }
 0x1b9   :  { %v2698_v29 = vpop.trf.xlu2 }
 0x1bc   :  { %v312_v30 = vpop.trf.xlu1  ;;  %v2700_v31 = vpop.trf.xlu0 }
 0x1bd   :  { %2277 = vmatmul.msk.f32.gmra.mxu1 %vm86_vm0, %v312_v30  ;;  %2263 = vmatmul.msk.f32.gmra.mxu0 %vm86_vm0, %v2624_v44 }
 0x1c1   :  { %v2707_v33 = vpop.trf.xlu2 }
 0x1c4   :  { %v2709_v34 = vpop.trf.xlu0  ;;  %v2824_v5 = vpop.trf.xlu1 }
 0x1c5   :  { %2278 = vmatmul.msk.f32.gmra.mxu1 %vm86_vm0, %v2622_v43  ;;  %2264 = vmatmul.msk.f32.gmra.mxu0 %vm86_vm0, %v2629_v47 }
 0x1c9   :  { %v2717_v36 = vpop.trf.xlu2 }
 0x1cc   :  { %v2719_v37 = vpop.trf.xlu0  ;;  %v2834_v9 = vpop.trf.xlu1 }
 0x1cd   :  { %2279 = vmatmul.msk.f32.gmra.mxu1 %vm86_vm0, %v2627_v46  ;;  %2265 = vmatmul.msk.f32.gmra.mxu0 %vm86_vm0, %v2634_v50  ;;  %v2753_v46 = vpop.f32.mrf.mxu0 }
 0x1d1   :  { %v2725_v38 = vpop.trf.xlu2 }
 0x1d4   :  { %v2729_v40 = vpop.trf.xlu0  ;;  %v2842_v13 = vpop.trf.xlu1 }
 0x1d5   :  { %2280 = vmatmul.msk.f32.gmra.mxu1 %vm86_vm0, %v2632_v49  ;;  %2266 = vmatmul.msk.f32.gmra.mxu0 %vm86_vm0, %v2639_v53  ;;  %v2762_v49 = vpop.f32.mrf.mxu0 }
 0x1d9   :  { %v2735_v41 = vpop.trf.xlu2 }
 0x1dc   :  { %v2739_v43 = vpop.trf.xlu0 }
 0x1dd   :  { %2281 = vmatmul.msk.f32.gmra.mxu1 %vm86_vm0, %v2637_v52  ;;  %2267 = vmatmul.msk.f32.gmra.mxu0 %vm86_vm0, %v2644_v56  ;;  %v2771_v53 = vpop.f32.mrf.mxu0 }
 0x1e1   :  { %v2745_v44 = vpop.trf.xlu2 }
 0x1e4   :  { %v2747_v45 = vpop.trf.xlu0 }
 0x1e5   :  { %2282 = vmatmul.msk.f32.gmra.mxu1 %vm86_vm0, %v2642_v55  ;;  %2268 = vmatmul.msk.f32.gmra.mxu0 %vm86_vm0, %v2649_v60  ;;  %v2781_v56 = vpop.f32.mrf.mxu0 }
 0x1e9   :  { %v429_v47 = vpop.trf.xlu2 }
 0x1ea   :  { %2330 = vmatmul.msk.f32.vlgmr.msra.gmra.mxu2 %vm86_vm0, %v429_v47 }
 0x1ec   :  { %v2756_v48 = vpop.trf.xlu0 }
 0x1ed   :  { %2283 = vmatmul.msk.f32.gmra.mxu1 %vm86_vm0, %v2647_v59  ;;  %2269 = vmatmul.msk.f32.gmra.mxu0 %vm86_vm0, %v2654_v0  ;;  %v2796_v60 = vpop.f32.mrf.mxu0 }
 0x1f1   :  { %v430_v50 = vpop.trf.xlu2 }
 0x1f2   :  { %2331 = vmatmul.msk.f32.gmra.mxu2 %vm86_vm0, %v430_v50 }
 0x1f4   :  { %v2765_v51 = vpop.trf.xlu0 }
 0x1f5   :  { %2284 = vmatmul.msk.f32.gmra.mxu1 %vm86_vm0, %v2652_v63  ;;  %2270 = vmatmul.msk.f32.gmra.mxu0 %vm86_vm0, %v2659_v4  ;;  %v2806_v63 = vpop.f32.mrf.mxu0 }
 0x1f9   :  { %v431_v52 = vpop.trf.xlu2 }
 0x1fa   :  { %2332 = vmatmul.msk.f32.gmra.mxu2 %vm86_vm0, %v431_v52 }
 0x1fc   :  { %v2774_v54 = vpop.trf.xlu0 }
 0x1fd   :  { %2285 = vmatmul.msk.f32.gmra.mxu1 %vm86_vm0, %v2657_v3  ;;  %2271 = vmatmul.msk.f32.gmra.mxu0 %vm86_vm0, %v2664_v8  ;;  %v2817_v3 = vpop.f32.mrf.mxu0 }
 0x201   :  { %v432_v55 = vpop.trf.xlu2 }
 0x202   :  { %2333 = vmatmul.msk.f32.gmra.mxu2 %vm86_vm0, %v432_v55 }
 0x204   :  { %v2783_v57 = vpop.trf.xlu0 }
 0x205   :  { %2286 = vmatmul.msk.f32.gmra.mxu1 %vm86_vm0, %v2662_v6  ;;  %2272 = vmatmul.msk.f32.gmra.mxu0 %vm86_vm0, %v2669_v11  ;;  %v2828_v7 = vpop.f32.mrf.mxu0 }
 0x209   :  { %v433_v58 = vpop.trf.xlu2 }
 0x20a   :  { %2334 = vmatmul.msk.f32.gmra.mxu2 %vm86_vm0, %v433_v58 }
 0x20c   :  { %v2790_v59 = vpop.trf.xlu0 }
 0x20d   :  { %2287 = vmatmul.msk.f32.gmra.mxu1 %vm86_vm0, %v2667_v10  ;;  %2273 = vmatmul.msk.f32.gmra.mxu0 %vm86_vm0, %v2674_v15 }
 0x210   :  { %537 = vxpose.xlu0.b32.start [1/2] (short) %v2682_v21, 128 }
 0x211   :  { %v434_v61 = vpop.trf.xlu2 }
 0x212   :  { %2335 = vmatmul.msk.f32.gmra.mxu2 %vm86_vm0, %v434_v61 }
 0x214   :  { %v2800_v62 = vpop.trf.xlu0 }
 0x215   :  { %2288 = vmatmul.msk.f32.gmra.mxu1 %vm86_vm0, %v2672_v14  ;;  %2274 = vmatmul.msk.f32.gmra.mxu0 %vm86_vm0, %v2679_v19  ;;  %v2844_v14 = vpop.f32.mrf.mxu0 }
 0x218   :  { %538 = vxpose.xlu0.b32.end [2/2] (short) %v2691_v26, 128 }
 0x219   :  { %v435_v0 = vpop.trf.xlu2 }
 0x21a   :  { %2336 = vmatmul.msk.f32.gmra.mxu2 %vm86_vm0, %v435_v0 }
 0x21c   :  { %v2810_v1 = vpop.trf.xlu0 }
 0x21d   :  { %2289 = vmatmul.msk.f32.gmra.mxu1 %vm86_vm0, %v2677_v18  ;;  %2275 = vmatmul.msk.f32.gmra.mxu0 %vm86_vm0, %v2686_v23  ;;  %v2852_v18 = vpop.trf.xlu1  ;;  %v2854_v19 = vpop.f32.mrf.mxu0 }
 0x220   :  { %569 = vxpose.xlu1.b32.start [1/2] (short) %v2705_v32, 128 }
 0x221   :  { %v436_v2 = vpop.trf.xlu2 }
 0x222   :  { %2337 = vmatmul.msk.f32.gmra.mxu2 %vm86_vm0, %v436_v2 }
 0x224   :  { %v2820_v4 = vpop.trf.xlu0 }
 0x225   :  { %2290 = vmatmul.msk.f32.gmra.mxu1 %vm86_vm0, %v2684_v22  ;;  %v2861_v23 = vpop.trf.xlu1  ;;  %v2863_v24 = vpop.f32.mrf.mxu0 }
 0x228   :  { %570 = vxpose.xlu1.b32.end [2/2] (short) %v2715_v35, 128 }
 0x229   :  { %v437_v6 = vpop.trf.xlu2 }
 0x22a   :  { %2338 = vmatmul.msk.f32.gmra.mxu2 %vm86_vm0, %v437_v6 }
 0x22c   :  { %v2830_v8 = vpop.trf.xlu0 }
 0x22d   :  { %2291 = vmatmul.msk.f32.gmra.mxu1 %vm86_vm0, %v2689_v25  ;;  %v2870_v27 = vpop.trf.xlu1  ;;  %v2875_v30 = vpop.f32.mrf.mxu0 }
 0x230   :  { %601 = vxpose.xlu2.b32.start [1/2] (short) %v2727_v39, 128 }
 0x231   :  { %v438_v10 = vpop.trf.xlu2 }
 0x232   :  { %v2837_v11 = vpop.f32.mrf.mxu1  ;;  %2339 = vmatmul.msk.f32.gmra.mxu2 %vm86_vm0, %v438_v10 }
 0x234   :  { %v457_v12 = vpop.trf.xlu0 }
 0x235   :  { %2292 = vmatmul.msk.f32.gmra.mxu1 %vm86_vm0, %v2698_v29  ;;  %v2879_v32 = vpop.trf.xlu1  ;;  %v2888_v39 = vpop.f32.mrf.mxu0 }
 0x238   :  { %602 = vxpose.xlu2.b32.end [2/2] (short) %v2737_v42, 128 }
 0x239   :  { %v439_v15 = vpop.trf.xlu2 }
 0x23a   :  { %v2847_v16 = vpop.f32.mrf.mxu1  ;;  %2340 = vmatmul.msk.f32.gmra.mxu2 %vm86_vm0, %v439_v15 }
 0x23c   :  { %v458_v17 = vpop.trf.xlu0 }
 0x23d   :  { %2293 = vmatmul.msk.f32.gmra.mxu1 %vm86_vm0, %v2707_v33  ;;  %v2897_v50 = vpop.f32.mrf.mxu0 }
 0x241   :  { %v440_v20 = vpop.trf.xlu2 }
 0x242   :  { %v2856_v21 = vpop.f32.mrf.mxu1  ;;  %2341 = vmatmul.msk.f32.gmra.mxu2 %vm86_vm0, %v440_v20 }
 0x244   :  { %v459_v22 = vpop.trf.xlu0 }
 0x245   :  { %2294 = vmatmul.msk.f32.gmra.mxu1 %vm86_vm0, %v2693_v28  ;;  %v2908_v61 = vpop.f32.mrf.mxu0 }
 0x24a   :  { %v2865_v25 = vpop.f32.mrf.mxu1  ;;  %2342 = vmatmul.msk.f32.gmra.mxu2 %vm86_vm0, %v457_v12 }
 0x24c   :  { %v460_v26 = vpop.trf.xlu0 }
 0x24d   :  { %2295 = vmatmul.msk.f32.gmra.mxu1 %vm86_vm0, %v2700_v31  ;;  %v2886_v31 = vpop.trf.xlu1  ;;  %v2922_v10 = vpop.f32.mrf.mxu0 }
 0x252   :  { %v2872_v29 = vpop.f32.mrf.mxu1  ;;  %2343 = vmatmul.msk.f32.gmra.mxu2 %vm86_vm0, %v458_v17 }
 0x254   :  { %v461_v28 = vpop.trf.xlu0 }
 0x255   :  { %2296 = vmatmul.msk.f32.gmra.mxu1 %vm86_vm0, %v2709_v34  ;;  %v2895_v47 = vpop.trf.xlu1 }
 0x25a   :  { %v2881_v33 = vpop.f32.mrf.mxu1  ;;  %2344 = vmatmul.msk.f32.gmra.mxu2 %vm86_vm0, %v459_v22  ;;  %v1277_v22 = vpop.f32.mrf.mxu0 }
 0x25c   :  { %v462_v35 = vpop.trf.xlu0 }
 0x25d   :  { %2297 = vmatmul.msk.f32.gmra.mxu1 %vm86_vm0, %v2719_v37  ;;  %v2906_v58 = vpop.trf.xlu1 }
 0x262   :  { %v2890_v42 = vpop.f32.mrf.mxu1  ;;  %2345 = vmatmul.msk.f32.gmra.mxu2 %vm86_vm0, %v460_v26 }
 0x264   :  { %v463_v34 = vpop.trf.xlu0 }
 0x265   :  { %2298 = vmatmul.msk.f32.gmra.mxu1 %vm86_vm0, %v2729_v40  ;;  %v2917_v2 = vpop.trf.xlu1 }
 0x26a   :  { %v2899_v52 = vpop.f32.mrf.mxu1  ;;  %2346 = vmatmul.msk.f32.gmra.mxu2 %vm86_vm0, %v461_v28 }
 0x26c   :  { %v464_v55 = vpop.trf.xlu0 }
 0x26d   :  { %2299 = vmatmul.msk.f32.gmra.mxu1 %vm86_vm0, %v2739_v43  ;;  %v2904_v37 = vpop.f32.mrf.mxu2  ;;  %v2928_v15 = vpop.trf.xlu1 }
 0x272   :  { %v2910_v40 = vpop.f32.mrf.mxu1  ;;  %2347 = vmatmul.msk.f32.gmra.mxu2 %vm86_vm0, %v462_v35 }
 0x274   :  { %v465_v6 = vpop.trf.xlu0 }
 0x275   :  { %2300 = vmatmul.msk.f32.gmra.mxu1 %vm86_vm0, %v2747_v45  ;;  %v2915_v0 = vpop.f32.mrf.mxu2  ;;  %v2937_v26 = vpop.trf.xlu1 }
 0x276   :  { %3410 = vst [vmem:[#allocation12_spill] sm:$0xff] %v2915_v0 }
 0x27a   :  { %v2919_v43 = vpop.f32.mrf.mxu1  ;;  %2348 = vmatmul.msk.f32.gmra.mxu2 %vm86_vm0, %v463_v34  ;;  %v1280_v34 = vpop.f32.mrf.mxu0 }
 0x27c   :  { %v466_v45 = vpop.trf.xlu0 }
 0x27d   :  { %2301 = vmatmul.msk.f32.gmra.mxu1 %vm86_vm0, %v2756_v48  ;;  %v2926_v12 = vpop.f32.mrf.mxu2 }
 0x27e   :  { %3411 = vst [vmem:[#allocation13_spill] sm:$0xff] %v2926_v12 }
 0x282   :  { %v2930_v17 = vpop.f32.mrf.mxu1  ;;  %2349 = vmatmul.msk.f32.gmra.mxu2 %vm86_vm0, %v464_v55  ;;  %v2947_v55 = vpop.trf.xlu1 }
 0x284   :  { %v467_v35 = vpop.trf.xlu0 }
 0x285   :  { %2302 = vmatmul.msk.f32.gmra.mxu1 %vm86_vm0, %v2765_v51  ;;  %v2935_v20 = vpop.f32.mrf.mxu2 }
 0x286   :  { %3412 = vst [vmem:[#allocation14_spill] sm:$0xff] %v2935_v20 }
 0x28a   :  { %v2939_v28 = vpop.f32.mrf.mxu1  ;;  %2350 = vmatmul.msk.f32.gmra.mxu2 %vm86_vm0, %v465_v6 }
 0x28c   :  { %v468_v6 = vpop.trf.xlu0 }
 0x28d   :  { %2303 = vmatmul.msk.f32.gmra.mxu1 %vm86_vm0, %v2774_v54  ;;  %v2944_v48 = vpop.f32.mrf.mxu2  ;;  %v2957_v54 = vpop.trf.xlu1 }
 0x28e   :  { %3413 = vst [vmem:[#allocation15_spill] sm:$0xff] %v2944_v48  ;;  %v1283_v48 = vpop.f32.mrf.mxu0 }
 0x290   :  { %1805 = vxpose.xlu0.b32.start [1/16] (narrow) %v2753_v46, 8 }
 0x292   :  { %v2949_v51 = vpop.f32.mrf.mxu1  ;;  %2351 = vmatmul.msk.f32.gmra.mxu2 %vm86_vm0, %v466_v45 }
 0x295   :  { %2304 = vmatmul.msk.f32.gmra.mxu1 %vm86_vm0, %v2783_v57  ;;  %v2954_v20 = vpop.f32.mrf.mxu2  ;;  %v469_v57 = vpop.trf.xlu0 }
 0x296   :  { %3414 = vst [vmem:[#allocation16_spill] sm:$0xff] %v2954_v20  ;;  %v2967_v45 = vpop.trf.xlu1 }
 0x298   :  { %1806 = vxpose.xlu0.b32.cont [2/16] (narrow) %v2762_v49, 8  ;;  %v1286_v49 = vpop.f32.mrf.mxu0 }
 0x29a   :  { %v2959_v12 = vpop.f32.mrf.mxu1  ;;  %2352 = vmatmul.msk.f32.gmra.mxu2 %vm86_vm0, %v467_v35 }
 0x29d   :  { %2305 = vmatmul.msk.f32.gmra.mxu1 %vm86_vm0, %v2790_v59  ;;  %v2964_v46 = vpop.f32.mrf.mxu2 }
 0x29e   :  { %3415 = vst [vmem:[#allocation17_spill] sm:$0xff] %v2964_v46  ;;  %v489_v59 = vpop.trf.xlu1  ;;  %v2977_v46 = vpop.trf.xlu2 }
 0x2a0   :  { %1807 = vxpose.xlu0.b32.cont [3/16] (narrow) %v2771_v53, 8  ;;  %1837 = vxpose.xlu1.b32.start [1/16] (narrow) %v1277_v22, 8  ;;  %v470_v22 = vpop.trf.xlu0  ;;  %v1289_v0 = vpop.f32.mrf.mxu0 }
 0x2a2   :  { %v2969_v20 = vpop.f32.mrf.mxu1  ;;  %2353 = vmatmul.msk.f32.gmra.mxu2 %vm86_vm0, %v468_v6 }
 0x2a5   :  { %2306 = vmatmul.msk.f32.gmra.mxu1 %vm86_vm0, %v2800_v62  ;;  %v2974_v35 = vpop.f32.mrf.mxu2 }
 0x2a8   :  { %1808 = vxpose.xlu0.b32.cont [4/16] (narrow) %v2781_v56, 8  ;;  %1838 = vxpose.xlu1.b32.cont [2/16] (narrow) %v1280_v34, 8  ;;  %v2988_v56 = vpop.trf.xlu2  ;;  %v490_v34 = vpop.trf.xlu1 }
 0x2aa   :  { %v2979_v53 = vpop.f32.mrf.mxu1  ;;  %2354 = vmatmul.msk.f32.gmra.mxu2 %vm86_vm0, %v469_v57 }
 0x2ad   :  { %2307 = vmatmul.msk.f32.gmra.mxu1 %vm86_vm0, %v2810_v1  ;;  %v2984_v6 = vpop.f32.mrf.mxu2  ;;  %v471_v1 = vpop.trf.xlu0 }
 0x2ae   :  { %3416 = vst [vmem:[#allocation18_spill] sm:$0xff] %v2984_v6  ;;  %v1292_v6 = vpop.f32.mrf.mxu0 }
 0x2b0   :  { %1869 = vxpose.xlu2.b32.start [1/16] (narrow) %v2856_v21, 8  ;;  %1809 = vxpose.xlu0.b32.cont [5/16] (narrow) %v2796_v60, 8  ;;  %v2999_v60 = vpop.trf.xlu2 }
 0x2b1   :  { %1839 = vxpose.xlu1.b32.cont [3/16] (narrow) %v1283_v48, 8 }
 0x2b2   :  { %v2990_v62 = vpop.f32.mrf.mxu1  ;;  %2355 = vmatmul.msk.f32.gmra.mxu2 %vm86_vm0, %v470_v22 }
 0x2b5   :  { %2308 = vmatmul.msk.f32.gmra.mxu1 %vm86_vm0, %v2820_v4  ;;  %v2995_v57 = vpop.f32.mrf.mxu2  ;;  %v491_v4 = vpop.trf.xlu1 }
 0x2b6   :  { %v472_v22 = vpop.trf.xlu0 }
 0x2b8   :  { %1870 = vxpose.xlu2.b32.cont [2/16] (narrow) %v2865_v25, 8  ;;  %1810 = vxpose.xlu0.b32.cont [6/16] (narrow) %v2806_v63, 8  ;;  %v3010_v63 = vpop.trf.xlu2  ;;  %v1295_v25 = vpop.f32.mrf.mxu0 }
 0x2b9   :  { %1840 = vxpose.xlu1.b32.cont [4/16] (narrow) %v1286_v49, 8 }
 0x2ba   :  { %v3001_v21 = vpop.f32.mrf.mxu1  ;;  %2356 = vmatmul.msk.f32.gmra.mxu2 %vm86_vm0, %v471_v1 }
 0x2bd   :  { %2309 = vmatmul.msk.f32.gmra.mxu1 %vm86_vm0, %v2830_v8  ;;  %v3006_v48 = vpop.f32.mrf.mxu2  ;;  %v492_v1 = vpop.trf.xlu1 }
 0x2c0   :  { %1871 = vxpose.xlu2.b32.cont [3/16] (narrow) %v2872_v29, 8  ;;  %1811 = vxpose.xlu0.b32.cont [7/16] (narrow) %v2817_v3, 8  ;;  %v3021_v3 = vpop.trf.xlu2 }
 0x2c1   :  { %1841 = vxpose.xlu1.b32.cont [5/16] (narrow) %v1289_v0, 8  ;;  %v1298_v0 = vpop.f32.mrf.mxu0 }
 0x2c2   :  { %v3012_v49 = vpop.f32.mrf.mxu1  ;;  %2357 = vmatmul.msk.f32.gmra.mxu2 %vm86_vm0, %v472_v22 }
 0x2c5   :  { %2310 = vmatmul.msk.f32.gmra.mxu1 %vm86_vm0, %v2824_v5  ;;  %v3017_v8 = vpop.f32.mrf.mxu2  ;;  %v493_v5 = vpop.trf.xlu1 }
 0x2c8   :  { %1872 = vxpose.xlu2.b32.cont [4/16] (narrow) %v2881_v33, 8  ;;  %1812 = vxpose.xlu0.b32.cont [8/16] (narrow) %v2828_v7, 8  ;;  %v3032_v7 = vpop.trf.xlu2 }
 0x2c9   :  { %1842 = vxpose.xlu1.b32.cont [6/16] (narrow) %v1292_v6, 8 }
 0x2ca   :  { %v3023_v29 = vpop.f32.mrf.mxu1  ;;  %2358 = vmatmul.msk.f32.gmra.mxu2 %vm86_vm0, %v489_v59 }
 0x2cd   :  { %2311 = vmatmul.msk.f32.gmra.mxu1 %vm86_vm0, %v2834_v9  ;;  %v3028_v22 = vpop.f32.mrf.mxu2  ;;  %v1301_v9 = vpop.f32.mrf.mxu0 }
 0x2ce   :  { %v494_v6 = vpop.trf.xlu1 }
 0x2d0   :  { %1873 = vxpose.xlu2.b32.cont [5/16] (narrow) %v2890_v42, 8  ;;  %1813 = vxpose.xlu0.b32.cont [9/16] (narrow) %v2844_v14, 8  ;;  %v3043_v14 = vpop.trf.xlu2 }
 0x2d1   :  { %1843 = vxpose.xlu1.b32.cont [7/16] (narrow) %v1295_v25, 8 }
 0x2d2   :  { %v3034_v33 = vpop.f32.mrf.mxu1  ;;  %2359 = vmatmul.msk.f32.gmra.mxu2 %vm86_vm0, %v490_v34 }
 0x2d5   :  { %2312 = vmatmul.msk.f32.gmra.mxu1 %vm86_vm0, %v2842_v13  ;;  %v3039_v59 = vpop.f32.mrf.mxu2  ;;  %v1304_v13 = vpop.f32.mrf.mxu0 }
 0x2d8   :  { %1874 = vxpose.xlu2.b32.cont [6/16] (narrow) %v2899_v52, 8  ;;  %1814 = vxpose.xlu0.b32.cont [10/16] (narrow) %v2854_v19, 8  ;;  %v3054_v19 = vpop.trf.xlu2 }
 0x2d9   :  { %1844 = vxpose.xlu1.b32.cont [8/16] (narrow) %v1298_v0, 8 }
 0x2da   :  { %v3045_v42 = vpop.f32.mrf.mxu1  ;;  %2360 = vmatmul.msk.f32.gmra.mxu2 %vm86_vm0, %v491_v4 }
 0x2dd   :  { %2313 = vmatmul.msk.f32.gmra.mxu1 %vm86_vm0, %v2852_v18  ;;  %v3050_v34 = vpop.f32.mrf.mxu2  ;;  %v495_v18 = vpop.trf.xlu1 }
 0x2e0   :  { %1875 = vxpose.xlu2.b32.cont [7/16] (narrow) %v2910_v40, 8  ;;  %1815 = vxpose.xlu0.b32.cont [11/16] (narrow) %v2863_v24, 8  ;;  %v3065_v40 = vpop.trf.xlu2  ;;  %v1307_v24 = vpop.f32.mrf.mxu0 }
 0x2e1   :  { %1845 = vxpose.xlu1.b32.cont [9/16] (narrow) %v1301_v9, 8 }
 0x2e2   :  { %v3056_v52 = vpop.f32.mrf.mxu1  ;;  %2361 = vmatmul.msk.f32.gmra.mxu2 %vm86_vm0, %v492_v1 }
 0x2e5   :  { %2314 = vmatmul.msk.f32.gmra.mxu1 %vm86_vm0, %v2861_v23  ;;  %v3061_v4 = vpop.f32.mrf.mxu2  ;;  %v496_v23 = vpop.trf.xlu1 }
 0x2e8   :  { %1876 = vxpose.xlu2.b32.cont [8/16] (narrow) %v2919_v43, 8  ;;  %1816 = vxpose.xlu0.b32.cont [12/16] (narrow) %v2875_v30, 8  ;;  %v3076_v30 = vpop.trf.xlu2  ;;  %v1310_v0 = vpop.f32.mrf.mxu0 }
 0x2e9   :  { %1846 = vxpose.xlu1.b32.cont [10/16] (narrow) %v1304_v13, 8 }
 0x2ea   :  { %v3067_v25 = vpop.f32.mrf.mxu1  ;;  %2362 = vmatmul.msk.f32.gmra.mxu2 %vm86_vm0, %v493_v5 }
 0x2ed   :  { %2315 = vmatmul.msk.f32.gmra.mxu1 %vm86_vm0, %v2870_v27  ;;  %v3072_v1 = vpop.f32.mrf.mxu2  ;;  %v497_v27 = vpop.trf.xlu1 }
 0x2f0   :  { %1877 = vxpose.xlu2.b32.cont [9/16] (narrow) %v2930_v17, 8  ;;  %1817 = vxpose.xlu0.b32.cont [13/16] (narrow) %v2888_v39, 8  ;;  %v531_v39 = vpop.trf.xlu2 }
 0x2f1   :  { %1847 = vxpose.xlu1.b32.cont [11/16] (narrow) %v1307_v24, 8  ;;  %2384 = vmatmul.msk.f32.vlgmr.msra.gmra.mxu3 %vm86_vm0, %v531_v39 }
 0x2f2   :  { %v3078_v43 = vpop.f32.mrf.mxu1  ;;  %2363 = vmatmul.msk.f32.gmra.mxu2 %vm86_vm0, %v494_v6 }
 0x2f5   :  { %2316 = vmatmul.msk.f32.gmra.mxu1 %vm86_vm0, %v2879_v32  ;;  %v3083_v5 = vpop.f32.mrf.mxu2  ;;  %v1313_v32 = vpop.f32.mrf.mxu0 }
 0x2f6   :  { %v498_v6 = vpop.trf.xlu1 }
 0x2f8   :  { %1878 = vxpose.xlu2.b32.cont [10/16] (narrow) %v2939_v28, 8  ;;  %1818 = vxpose.xlu0.b32.cont [14/16] (narrow) %v2897_v50, 8  ;;  %v532_v50 = vpop.trf.xlu2 }
 0x2f9   :  { %1848 = vxpose.xlu1.b32.cont [12/16] (narrow) %v1310_v0, 8  ;;  %2385 = vmatmul.msk.f32.gmra.mxu3 %vm86_vm0, %v532_v50 }
 0x2fa   :  { %v3087_v17 = vpop.f32.mrf.mxu1  ;;  %2364 = vmatmul.msk.f32.gmra.mxu2 %vm86_vm0, %v495_v18 }
 0x2fd   :  { %2317 = vmatmul.msk.f32.gmra.mxu1 %vm86_vm0, %v2886_v31  ;;  %v3093_v9 = vpop.f32.mrf.mxu2  ;;  %v1316_v13 = vpop.f32.mrf.mxu0 }
 0x300   :  { %1879 = vxpose.xlu2.b32.cont [11/16] (narrow) %v2949_v51, 8  ;;  %1819 = vxpose.xlu0.b32.cont [15/16] (narrow) %v2908_v61, 8  ;;  %v533_v61 = vpop.trf.xlu2 }
 0x301   :  { %1849 = vxpose.xlu1.b32.cont [13/16] (narrow) %v1313_v32, 8  ;;  %2386 = vmatmul.msk.f32.gmra.mxu3 %vm86_vm0, %v533_v61 }
 0x302   :  { %v3097_v28 = vpop.f32.mrf.mxu1  ;;  %2365 = vmatmul.msk.f32.gmra.mxu2 %vm86_vm0, %v496_v23 }
 0x305   :  { %2318 = vmatmul.msk.f32.gmra.mxu1 %vm86_vm0, %v2895_v47  ;;  %v3103_v31 = vpop.f32.mrf.mxu2  ;;  %v499_v47 = vpop.trf.xlu1 }
 0x308   :  { %1880 = vxpose.xlu2.b32.cont [12/16] (narrow) %v2959_v12, 8  ;;  %1820 = vxpose.xlu0.b32.end [16/16] (narrow) %v2922_v10, 8  ;;  %v534_v10 = vpop.trf.xlu2 }
 0x309   :  { %1850 = vxpose.xlu1.b32.cont [14/16] (narrow) %v1316_v13, 8  ;;  %2387 = vmatmul.msk.f32.gmra.mxu3 %vm86_vm0, %v534_v10 }
 0x30a   :  { %v3107_v51 = vpop.f32.mrf.mxu1  ;;  %2366 = vmatmul.msk.f32.gmra.mxu2 %vm86_vm0, %v497_v27 }
 0x30d   :  { %2319 = vmatmul.msk.f32.gmra.mxu1 %vm86_vm0, %v2906_v58  ;;  %v3113_v18 = vpop.f32.mrf.mxu2  ;;  %v500_v24 = vpop.trf.xlu1 }
 0x310   :  { %1881 = vxpose.xlu2.b32.cont [13/16] (narrow) %v2969_v20, 8  ;;  %1901 = vxpose.xlu0.b32.start [1/16] (narrow) %v3012_v49, 8 }
 0x311   :  { %1851 = vxpose.xlu1.b32.cont [15/16] (narrow) %v2837_v11, 8  ;;  %v535_v11 = vpop.trf.xlu2 }
 0x312   :  { %v3118_v12 = vpop.f32.mrf.mxu1  ;;  %2367 = vmatmul.msk.f32.gmra.mxu2 %vm86_vm0, %v498_v6  ;;  %2388 = vmatmul.msk.f32.gmra.mxu3 %vm86_vm0, %v535_v11 }
 0x315   :  { %2320 = vmatmul.msk.f32.gmra.mxu1 %vm86_vm0, %v2917_v2  ;;  %v3124_v58 = vpop.f32.mrf.mxu2 }
 0x318   :  { %1882 = vxpose.xlu2.b32.cont [14/16] (narrow) %v2979_v53, 8  ;;  %1902 = vxpose.xlu0.b32.cont [2/16] (narrow) %v3023_v29, 8  ;;  %v501_v53 = vpop.trf.xlu1 }
 0x319   :  { %1852 = vxpose.xlu1.b32.end [16/16] (narrow) %v2847_v16, 8  ;;  %v536_v49 = vpop.trf.xlu2 }
 0x31a   :  { %v3129_v20 = vpop.f32.mrf.mxu1  ;;  %2368 = vmatmul.msk.f32.gmra.mxu2 %vm86_vm0, %v499_v47  ;;  %2389 = vmatmul.msk.f32.gmra.mxu3 %vm86_vm0, %v536_v49 }
 0x31d   :  { %2321 = vmatmul.msk.f32.gmra.mxu1 %vm86_vm0, %v2928_v15  ;;  %v3135_v2 = vpop.f32.mrf.mxu2  ;;  %v553_v15 = vpop.trf.xlu0 }
 0x320   :  { %1883 = vxpose.xlu2.b32.cont [15/16] (narrow) %v2990_v62, 8  ;;  %1903 = vxpose.xlu0.b32.cont [3/16] (narrow) %v3034_v33, 8  ;;  %v502_v33 = vpop.trf.xlu1 }
 0x322   :  { %v3139_v29 = vpop.f32.mrf.mxu1  ;;  %2369 = vmatmul.msk.f32.gmra.mxu2 %vm86_vm0, %v500_v24  ;;  %2390 = vmatmul.msk.f32.gmra.mxu3 %vm86_vm0, %v553_v15 }
 0x325   :  { %2322 = vmatmul.msk.f32.gmra.mxu1 %vm86_vm0, %v2937_v26  ;;  %v3145_v16 = vpop.f32.mrf.mxu2  ;;  %v554_v26 = vpop.trf.xlu0 }
 0x328   :  { %1884 = vxpose.xlu2.b32.end [16/16] (narrow) %v3001_v21, 8  ;;  %1904 = vxpose.xlu0.b32.cont [4/16] (narrow) %v3045_v42, 8  ;;  %v503_v42 = vpop.trf.xlu1 }
 0x32a   :  { %v3149_v62 = vpop.f32.mrf.mxu1  ;;  %2370 = vmatmul.msk.f32.gmra.mxu2 %vm86_vm0, %v501_v53  ;;  %2391 = vmatmul.msk.f32.gmra.mxu3 %vm86_vm0, %v554_v26 }
 0x32d   :  { %2323 = vmatmul.msk.f32.gmra.mxu1 %vm86_vm0, %v2947_v55  ;;  %v3155_v23 = vpop.f32.mrf.mxu2  ;;  %v555_v55 = vpop.trf.xlu0 }
 0x330   :  { %1905 = vxpose.xlu0.b32.cont [5/16] (narrow) %v3056_v52, 8  ;;  %v504_v39 = vpop.trf.xlu1 }
 0x332   :  { %v3158_v0 = vpop.f32.mrf.mxu1  ;;  %2371 = vmatmul.msk.f32.gmra.mxu2 %vm86_vm0, %v502_v33  ;;  %2392 = vmatmul.msk.f32.gmra.mxu3 %vm86_vm0, %v555_v55 }
 0x335   :  { %2324 = vmatmul.msk.f32.gmra.mxu1 %vm86_vm0, %v2957_v54  ;;  %v3164_v21 = vpop.f32.mrf.mxu2  ;;  %v556_v54 = vpop.trf.xlu0 }
 0x338   :  { %1906 = vxpose.xlu0.b32.cont [6/16] (narrow) %v3067_v25, 8 }
 0x33a   :  { %v3167_v27 = vpop.f32.mrf.mxu1  ;;  %2372 = vmatmul.msk.f32.gmra.mxu2 %vm86_vm0, %v503_v42  ;;  %2393 = vmatmul.msk.f32.gmra.mxu3 %vm86_vm0, %v556_v54 }
 0x33d   :  { %2325 = vmatmul.msk.f32.gmra.mxu1 %vm86_vm0, %v2967_v45  ;;  %v3173_v52 = vpop.f32.mrf.mxu2  ;;  %v557_v45 = vpop.trf.xlu0 }
 0x340   :  { %1907 = vxpose.xlu0.b32.cont [7/16] (narrow) %v3078_v43, 8 }
 0x342   :  { %v1421_v32 = vpop.f32.mrf.mxu1  ;;  %2373 = vmatmul.msk.f32.gmra.mxu2 %vm86_vm0, %v504_v39  ;;  %2394 = vmatmul.msk.f32.gmra.mxu3 %vm86_vm0, %v557_v45 }
 0x343   :  { %1933 = vxpose.xlu1.b32.start [1/16] (narrow) %v1421_v32, 8 }
 0x345   :  { %2326 = vmatmul.msk.f32.gmra.mxu1 %vm86_vm0, %v2717_v36  ;;  %v3180_v25 = vpop.f32.mrf.mxu2  ;;  %v558_v36 = vpop.trf.xlu0 }
 0x348   :  { %1908 = vxpose.xlu0.b32.cont [8/16] (narrow) %v3087_v17, 8 }
 0x34a   :  { %v1424_v50 = vpop.f32.mrf.mxu1  ;;  %2374 = vmatmul.msk.f32.gmra.mxu2 %vm86_vm0, %v2977_v46  ;;  %2395 = vmatmul.msk.f32.gmra.mxu3 %vm86_vm0, %v558_v36 }
 0x34b   :  { %1934 = vxpose.xlu1.b32.cont [2/16] (narrow) %v1424_v50, 8 }
 0x34d   :  { %2327 = vmatmul.msk.f32.gmra.mxu1 %vm86_vm0, %v2725_v38  ;;  %v3188_v43 = vpop.f32.mrf.mxu2  ;;  %v559_v38 = vpop.trf.xlu0 }
 0x350   :  { %1909 = vxpose.xlu0.b32.cont [9/16] (narrow) %v3097_v28, 8 }
 0x352   :  { %v1427_v6 = vpop.f32.mrf.mxu1  ;;  %2375 = vmatmul.msk.f32.gmra.mxu2 %vm86_vm0, %v2988_v56  ;;  %2396 = vmatmul.msk.f32.gmra.mxu3 %vm86_vm0, %v559_v38 }
 0x353   :  { %1935 = vxpose.xlu1.b32.cont [3/16] (narrow) %v1427_v6, 8 }
 0x355   :  { %2328 = vmatmul.msk.f32.gmra.mxu1 %vm86_vm0, %v2735_v41  ;;  %v3196_v46 = vpop.f32.mrf.mxu2  ;;  %v560_v41 = vpop.trf.xlu0 }
 0x358   :  { %1910 = vxpose.xlu0.b32.cont [10/16] (narrow) %v3107_v51, 8 }
 0x35a   :  { %v1430_v17 = vpop.f32.mrf.mxu1  ;;  %2376 = vmatmul.msk.f32.gmra.mxu2 %vm86_vm0, %v2999_v60  ;;  %2397 = vmatmul.msk.f32.gmra.mxu3 %vm86_vm0, %v560_v41 }
 0x35b   :  { %1936 = vxpose.xlu1.b32.cont [4/16] (narrow) %v1430_v17, 8 }
 0x35d   :  { %2329 = vmatmul.msk.f32.gmra.mxu1 %vm86_vm0, %v2745_v44  ;;  %v3204_v56 = vpop.f32.mrf.mxu2  ;;  %v561_v60 = vpop.trf.xlu0 }
 0x360   :  { %1911 = vxpose.xlu0.b32.cont [11/16] (narrow) %v3118_v12, 8 }
 0x362   :  { %v1433_v28 = vpop.f32.mrf.mxu1  ;;  %2377 = vmatmul.msk.f32.gmra.mxu2 %vm86_vm0, %v3010_v63  ;;  %2398 = vmatmul.msk.f32.gmra.mxu3 %vm86_vm0, %v561_v60 }
 0x363   :  { %1937 = vxpose.xlu1.b32.cont [5/16] (narrow) %v1433_v28, 8 }
 0x365   :  { %v3210_v13 = vpop.f32.mrf.mxu2  ;;  %v562_v63 = vpop.trf.xlu0 }
 0x368   :  { %1912 = vxpose.xlu0.b32.cont [12/16] (narrow) %v3129_v20, 8 }
 0x36a   :  { %v1436_v61 = vpop.f32.mrf.mxu1  ;;  %2378 = vmatmul.msk.f32.gmra.mxu2 %vm86_vm0, %v3021_v3  ;;  %2399 = vmatmul.msk.f32.gmra.mxu3 %vm86_vm0, %v562_v63 }
 0x36b   :  { %1938 = vxpose.xlu1.b32.cont [6/16] (narrow) %v1436_v61, 8 }
 0x36d   :  { %v3216_v44 = vpop.f32.mrf.mxu2  ;;  %v563_v3 = vpop.trf.xlu0 }
 0x370   :  { %1913 = vxpose.xlu0.b32.cont [13/16] (narrow) %v3139_v29, 8 }
 0x372   :  { %v1439_v51 = vpop.f32.mrf.mxu1  ;;  %2379 = vmatmul.msk.f32.gmra.mxu2 %vm86_vm0, %v3032_v7  ;;  %2400 = vmatmul.msk.f32.gmra.mxu3 %vm86_vm0, %v563_v3 }
 0x373   :  { %1939 = vxpose.xlu1.b32.cont [7/16] (narrow) %v1439_v51, 8 }
 0x374   :  { %v3230_v24 = vpop.f32.mrf.mxu3 }
 0x375   :  { %v3222_v47 = vpop.f32.mrf.mxu2  ;;  %v564_v7 = vpop.trf.xlu0 }
 0x378   :  { %1914 = vxpose.xlu0.b32.cont [14/16] (narrow) %v3149_v62, 8 }
 0x37a   :  { %v1442_v10 = vpop.f32.mrf.mxu1  ;;  %2380 = vmatmul.msk.f32.gmra.mxu2 %vm86_vm0, %v3043_v14  ;;  %2401 = vmatmul.msk.f32.gmra.mxu3 %vm86_vm0, %v564_v7 }
 0x37b   :  { %1940 = vxpose.xlu1.b32.cont [8/16] (narrow) %v1442_v10, 8 }
 0x37c   :  { %v3238_v14 = vpop.f32.mrf.mxu3 }
 0x37d   :  { %v3228_v12 = vpop.f32.mrf.mxu2  ;;  %v565_v53 = vpop.trf.xlu0 }
 0x380   :  { %1915 = vxpose.xlu0.b32.cont [15/16] (narrow) %v3158_v0, 8 }
 0x382   :  { %v1445_v11 = vpop.f32.mrf.mxu1  ;;  %2381 = vmatmul.msk.f32.gmra.mxu2 %vm86_vm0, %v3054_v19  ;;  %2402 = vmatmul.msk.f32.gmra.mxu3 %vm86_vm0, %v565_v53 }
 0x383   :  { %1941 = vxpose.xlu1.b32.cont [9/16] (narrow) %v1445_v11, 8 }
 0x384   :  { %v3246_v19 = vpop.f32.mrf.mxu3 }
 0x385   :  { %v3236_v20 = vpop.f32.mrf.mxu2  ;;  %v566_v15 = vpop.trf.xlu0 }
 0x388   :  { %1916 = vxpose.xlu0.b32.end [16/16] (narrow) %v3167_v27, 8 }
 0x38a   :  { %v1448_v49 = vpop.f32.mrf.mxu1  ;;  %2382 = vmatmul.msk.f32.gmra.mxu2 %vm86_vm0, %v3065_v40  ;;  %2403 = vmatmul.msk.f32.gmra.mxu3 %vm86_vm0, %v566_v15 }
 0x38b   :  { %1942 = vxpose.xlu1.b32.cont [10/16] (narrow) %v1448_v49, 8 }
 0x38c   :  { %v3254_v40 = vpop.f32.mrf.mxu3 }
 0x38d   :  { %v3244_v29 = vpop.f32.mrf.mxu2  ;;  %v567_v26 = vpop.trf.xlu0 }
 0x390   :  { %1997 = vxpose.xlu0.b32.start [1/16] (narrow) %v3028_v22, 8 }
 0x392   :  { %v1451_v62 = vpop.f32.mrf.mxu1  ;;  %2383 = vmatmul.msk.f32.gmra.mxu2 %vm86_vm0, %v3076_v30  ;;  %2404 = vmatmul.msk.f32.gmra.mxu3 %vm86_vm0, %v567_v26 }
 0x393   :  { %1943 = vxpose.xlu1.b32.cont [11/16] (narrow) %v1451_v62, 8 }
 0x395   :  { %v3252_v33 = vpop.f32.mrf.mxu2  ;;  %v3260_v42 = vpop.f32.mrf.mxu3 }
 0x396   :  { %v568_v30 = vpop.trf.xlu0 }
 0x398   :  { %1998 = vxpose.xlu0.b32.cont [2/16] (narrow) %v3039_v59, 8  ;;  %v585_v59 = vpop.trf.xlu1 }
 0x39a   :  { %v1454_v0 = vpop.f32.mrf.mxu1  ;;  %2405 = vmatmul.msk.f32.gmra.mxu3 %vm86_vm0, %v568_v30 }
 0x39b   :  { %1944 = vxpose.xlu1.b32.cont [12/16] (narrow) %v1454_v0, 8 }
 0x39d   :  { %v3258_v22 = vpop.f32.mrf.mxu2  ;;  %v3266_v39 = vpop.f32.mrf.mxu3 }
 0x3a0   :  { %1999 = vxpose.xlu0.b32.cont [3/16] (narrow) %v3050_v34, 8  ;;  %v586_v34 = vpop.trf.xlu1 }
 0x3a2   :  { %v1457_v55 = vpop.f32.mrf.mxu1  ;;  %2406 = vmatmul.msk.f32.gmra.mxu3 %vm86_vm0, %v585_v59 }
 0x3a3   :  { %1945 = vxpose.xlu1.b32.cont [13/16] (narrow) %v1457_v55, 8 }
 0x3a5   :  { %v3264_v27 = vpop.f32.mrf.mxu2  ;;  %v3272_v45 = vpop.f32.mrf.mxu3 }
 0x3a8   :  { %2000 = vxpose.xlu0.b32.cont [4/16] (narrow) %v3061_v4, 8  ;;  %v587_v4 = vpop.trf.xlu1 }
 0x3aa   :  { %v1460_v54 = vpop.f32.mrf.mxu1  ;;  %2407 = vmatmul.msk.f32.gmra.mxu3 %vm86_vm0, %v586_v34 }
 0x3ab   :  { %1946 = vxpose.xlu1.b32.cont [14/16] (narrow) %v1460_v54, 8 }
 0x3ad   :  { %v3270_v32 = vpop.f32.mrf.mxu2  ;;  %v3278_v6 = vpop.f32.mrf.mxu3 }
 0x3b0   :  { %2001 = vxpose.xlu0.b32.cont [5/16] (narrow) %v3072_v1, 8  ;;  %v588_v1 = vpop.trf.xlu1 }
 0x3b2   :  { %v1463_v50 = vpop.f32.mrf.mxu1  ;;  %2408 = vmatmul.msk.f32.gmra.mxu3 %vm86_vm0, %v587_v4 }
 0x3b3   :  { %1947 = vxpose.xlu1.b32.cont [15/16] (narrow) %v1463_v50, 8 }
 0x3b5   :  { %v3276_v36 = vpop.f32.mrf.mxu2  ;;  %v3284_v41 = vpop.f32.mrf.mxu3 }
 0x3b8   :  { %2002 = vxpose.xlu0.b32.cont [6/16] (narrow) %v3083_v5, 8  ;;  %v589_v5 = vpop.trf.xlu1 }
 0x3ba   :  { %v1466_v38 = vpop.f32.mrf.mxu1  ;;  %2409 = vmatmul.msk.f32.gmra.mxu3 %vm86_vm0, %v588_v1 }
 0x3bb   :  { %1948 = vxpose.xlu1.b32.end [16/16] (narrow) %v1466_v38, 8 }
 0x3bd   :  { %v3282_v17 = vpop.f32.mrf.mxu2  ;;  %v3291_v60 = vpop.f32.mrf.mxu3 }
 0x3c0   :  { %2003 = vxpose.xlu0.b32.cont [7/16] (narrow) %v3093_v9, 8  ;;  %v590_v9 = vpop.trf.xlu1 }
 0x3c2   :  { %2410 = vmatmul.msk.f32.gmra.mxu3 %vm86_vm0, %v589_v5 }
 0x3c3   :  { %2029 = vxpose.xlu1.b32.start [1/16] (narrow) %v3188_v43, 8 }
 0x3c5   :  { %v3289_v28 = vpop.f32.mrf.mxu2  ;;  %v3296_v63 = vpop.f32.mrf.mxu3 }
 0x3c8   :  { %2004 = vxpose.xlu0.b32.cont [8/16] (narrow) %v3103_v31, 8  ;;  %v591_v31 = vpop.trf.xlu1 }
 0x3ca   :  { %2411 = vmatmul.msk.f32.gmra.mxu3 %vm86_vm0, %v590_v9 }
 0x3cb   :  { %2030 = vxpose.xlu1.b32.cont [2/16] (narrow) %v3196_v46, 8 }
 0x3cd   :  { %v1613_v61 = vpop.f32.mrf.mxu2  ;;  %v3301_v51 = vpop.f32.mrf.mxu3 }
 0x3ce   :  { %2061 = vxpose.xlu2.b32.start [1/16] (narrow) %v1613_v61, 8 }
 0x3d0   :  { %2005 = vxpose.xlu0.b32.cont [9/16] (narrow) %v3113_v18, 8  ;;  %v592_v18 = vpop.trf.xlu1 }
 0x3d2   :  { %2412 = vmatmul.msk.f32.gmra.mxu3 %vm86_vm0, %v591_v31 }
 0x3d3   :  { %2031 = vxpose.xlu1.b32.cont [3/16] (narrow) %v3204_v56, 8 }
 0x3d5   :  { %v1616_v43 = vpop.f32.mrf.mxu2  ;;  %v3306_v3 = vpop.f32.mrf.mxu3 }
 0x3d6   :  { %2062 = vxpose.xlu2.b32.cont [2/16] (narrow) %v1616_v43, 8  ;;  %v3419_v43 = vld [vmem:[#allocation14_spill] sm:$0xff] }
 0x3d8   :  { %2006 = vxpose.xlu0.b32.cont [10/16] (narrow) %v3124_v58, 8  ;;  %v593_v58 = vpop.trf.xlu1 }
 0x3da   :  { %2413 = vmatmul.msk.f32.gmra.mxu3 %vm86_vm0, %v592_v18 }
 0x3db   :  { %2032 = vxpose.xlu1.b32.cont [4/16] (narrow) %v3210_v13, 8 }
 0x3dd   :  { %v1619_v46 = vpop.f32.mrf.mxu2  ;;  %v3311_v10 = vpop.f32.mrf.mxu3 }
 0x3de   :  { %2063 = vxpose.xlu2.b32.cont [3/16] (narrow) %v1619_v46, 8  ;;  %v3420_v46 = vld [vmem:[#allocation15_spill] sm:$0xff] }
 0x3e0   :  { %2007 = vxpose.xlu0.b32.cont [11/16] (narrow) %v3135_v2, 8  ;;  %v594_v2 = vpop.trf.xlu1 }
 0x3e2   :  { %2414 = vmatmul.msk.f32.gmra.mxu3 %vm86_vm0, %v593_v58 }
 0x3e3   :  { %2033 = vxpose.xlu1.b32.cont [5/16] (narrow) %v3216_v44, 8 }
 0x3e5   :  { %v1622_v56 = vpop.f32.mrf.mxu2  ;;  %v3316_v7 = vpop.f32.mrf.mxu3 }
 0x3e6   :  { %2064 = vxpose.xlu2.b32.cont [4/16] (narrow) %v1622_v56, 8  ;;  %v3421_v56 = vld [vmem:[#allocation16_spill] sm:$0xff] }
 0x3e8   :  { %2008 = vxpose.xlu0.b32.cont [12/16] (narrow) %v3145_v16, 8  ;;  %v595_v16 = vpop.trf.xlu1 }
 0x3ea   :  { %2415 = vmatmul.msk.f32.gmra.mxu3 %vm86_vm0, %v594_v2 }
 0x3eb   :  { %2034 = vxpose.xlu1.b32.cont [6/16] (narrow) %v3222_v47, 8 }
 0x3ed   :  { %v1625_v13 = vpop.f32.mrf.mxu2  ;;  %v3321_v11 = vpop.f32.mrf.mxu3 }
 0x3ee   :  { %2065 = vxpose.xlu2.b32.cont [5/16] (narrow) %v1625_v13, 8  ;;  %v3422_v13 = vld [vmem:[#allocation17_spill] sm:$0xff] }
 0x3f0   :  { %2009 = vxpose.xlu0.b32.cont [13/16] (narrow) %v3155_v23, 8  ;;  %v596_v23 = vpop.trf.xlu1 }
 0x3f2   :  { %2416 = vmatmul.msk.f32.gmra.mxu3 %vm86_vm0, %v595_v16 }
 0x3f3   :  { %2035 = vxpose.xlu1.b32.cont [7/16] (narrow) %v3228_v12, 8 }
 0x3f5   :  { %v1628_v44 = vpop.f32.mrf.mxu2  ;;  %v3326_v53 = vpop.f32.mrf.mxu3 }
 0x3f6   :  { %2066 = vxpose.xlu2.b32.cont [6/16] (narrow) %v1628_v44, 8 }
 0x3f8   :  { %2010 = vxpose.xlu0.b32.cont [14/16] (narrow) %v3164_v21, 8  ;;  %v597_v21 = vpop.trf.xlu1 }
 0x3fa   :  { %2417 = vmatmul.msk.f32.gmra.mxu3 %vm86_vm0, %v596_v23 }
 0x3fb   :  { %2036 = vxpose.xlu1.b32.cont [8/16] (narrow) %v3236_v20, 8 }
 0x3fd   :  { %v1631_v47 = vpop.f32.mrf.mxu2  ;;  %v3331_v49 = vpop.f32.mrf.mxu3 }
 0x3fe   :  { %2067 = vxpose.xlu2.b32.cont [7/16] (narrow) %v1631_v47, 8 }
 0x400   :  { %2011 = vxpose.xlu0.b32.cont [15/16] (narrow) %v3173_v52, 8  ;;  %v598_v52 = vpop.trf.xlu1 }
 0x402   :  { %2418 = vmatmul.msk.f32.gmra.mxu3 %vm86_vm0, %v597_v21 }
 0x403   :  { %2037 = vxpose.xlu1.b32.cont [9/16] (narrow) %v3244_v29, 8 }
 0x405   :  { %v1634_v12 = vpop.f32.mrf.mxu2  ;;  %v3336_v15 = vpop.f32.mrf.mxu3 }
 0x406   :  { %2068 = vxpose.xlu2.b32.cont [8/16] (narrow) %v1634_v12, 8 }
 0x408   :  { %2012 = vxpose.xlu0.b32.end [16/16] (narrow) %v3180_v25, 8  ;;  %v599_v25 = vpop.trf.xlu1 }
 0x40a   :  { %2419 = vmatmul.msk.f32.gmra.mxu3 %vm86_vm0, %v598_v52  ;;  %v1821_v52 = vpop.trf.xlu0 }
 0x40b   :  { %2038 = vxpose.xlu1.b32.cont [10/16] (narrow) %v3252_v33, 8  ;;  %2189 = vst [vmem:[#allocation8] sm:$0xf] %v1821_v52 }
 0x40d   :  { %v1637_v20 = vpop.f32.mrf.mxu2  ;;  %v3341_v62 = vpop.f32.mrf.mxu3 }
 0x40e   :  { %2069 = vxpose.xlu2.b32.cont [9/16] (narrow) %v1637_v20, 8 }
 0x410   :  { %2093 = vxpose.xlu0.b32.start [1/16] (narrow) %v3272_v45, 8  ;;  %v600_v26 = vpop.trf.xlu1 }
 0x412   :  { %2420 = vmatmul.msk.f32.gmra.mxu3 %vm86_vm0, %v599_v25  ;;  %v1917_v25 = vpop.trf.xlu0 }
 0x413   :  { %2039 = vxpose.xlu1.b32.cont [11/16] (narrow) %v3258_v22, 8  ;;  %v617_v22 = vpop.trf.xlu2  ;;  %2192 = vst [vmem:[#allocation8 + $0xc] sm:$0xf] %v1917_v25 }
 0x415   :  { %v1640_v29 = vpop.f32.mrf.mxu2  ;;  %v3346_v33 = vpop.f32.mrf.mxu3 }
 0x416   :  { %2070 = vxpose.xlu2.b32.cont [10/16] (narrow) %v1640_v29, 8 }
 0x418   :  { %2094 = vxpose.xlu0.b32.cont [2/16] (narrow) %v3278_v6, 8  ;;  %v1853_v29 = vpop.trf.xlu1 }
 0x419   :  { %2190 = vst [vmem:[#allocation8 + $0x4] sm:$0xf] %v1853_v29 }
 0x41a   :  { %2421 = vmatmul.msk.f32.gmra.mxu3 %vm86_vm0, %v600_v26 }
 0x41b   :  { %2040 = vxpose.xlu1.b32.cont [12/16] (narrow) %v3264_v27, 8 }
 0x41d   :  { %v3352_v0 = vpop.f32.mrf.mxu3 }
 0x41e   :  { %2071 = vxpose.xlu2.b32.cont [11/16] (narrow) %v3230_v24, 8  ;;  %v618_v24 = vpop.trf.xlu2 }
 0x420   :  { %2095 = vxpose.xlu0.b32.cont [3/16] (narrow) %v3284_v41, 8  ;;  %v1949_v26 = vpop.trf.xlu1 }
 0x421   :  { %2193 = vst [vmem:[#allocation8 + $0x10] sm:$0xf] %v1949_v26 }
 0x422   :  { %2422 = vmatmul.msk.f32.gmra.mxu3 %vm86_vm0, %v617_v22 }
 0x423   :  { %2041 = vxpose.xlu1.b32.cont [13/16] (narrow) %v3270_v32, 8 }
 0x425   :  { %v1709_v30 = vpop.f32.mrf.mxu3 }
 0x426   :  { %2072 = vxpose.xlu2.b32.cont [12/16] (narrow) %v3238_v14, 8  ;;  %v619_v14 = vpop.trf.xlu2 }
 0x428   :  { %2096 = vxpose.xlu0.b32.cont [4/16] (narrow) %v3291_v60, 8  ;;  %v3417_v60 = vld [vmem:[#allocation12_spill] sm:$0xff] }
 0x42a   :  { %2423 = vmatmul.msk.f32.gmra.mxu3 %vm86_vm0, %v618_v24 }
 0x42b   :  { %2042 = vxpose.xlu1.b32.cont [14/16] (narrow) %v3276_v36, 8 }
 0x42d   :  { %v1712_v55 = vpop.f32.mrf.mxu3 }
 0x42e   :  { %2073 = vxpose.xlu2.b32.cont [13/16] (narrow) %v3246_v19, 8  ;;  %v620_v19 = vpop.trf.xlu2 }
 0x430   :  { %2097 = vxpose.xlu0.b32.cont [5/16] (narrow) %v3296_v63, 8  ;;  %v3418_v63 = vld [vmem:[#allocation13_spill] sm:$0xff] }
 0x432   :  { %2424 = vmatmul.msk.f32.gmra.mxu3 %vm86_vm0, %v619_v14 }
 0x433   :  { %2043 = vxpose.xlu1.b32.cont [15/16] (narrow) %v3282_v17, 8 }
 0x434   :  { %v2013_v22 = vpop.trf.xlu0 }
 0x435   :  { %v1715_v27 = vpop.f32.mrf.mxu3  ;;  %2195 = vst [vmem:[#allocation8 + $0x18] sm:$0xf] %v2013_v22 }
 0x436   :  { %2074 = vxpose.xlu2.b32.cont [14/16] (narrow) %v3254_v40, 8  ;;  %v1469_v40 = vpop.f32.mrf.mxu1  ;;  %v621_v54 = vpop.trf.xlu2 }
 0x438   :  { %2098 = vxpose.xlu0.b32.cont [6/16] (narrow) %v3301_v51, 8 }
 0x43a   :  { %2425 = vmatmul.msk.f32.gmra.mxu3 %vm86_vm0, %v620_v19 }
 0x43b   :  { %2044 = vxpose.xlu1.b32.end [16/16] (narrow) %v3289_v28, 8 }
 0x43d   :  { %v1718_v59 = vpop.f32.mrf.mxu3 }
 0x43e   :  { %2075 = vxpose.xlu2.b32.cont [15/16] (narrow) %v3260_v42, 8  ;;  %v622_v42 = vpop.trf.xlu2  ;;  %v1472_v45 = vpop.f32.mrf.mxu1 }
 0x440   :  { %2099 = vxpose.xlu0.b32.cont [7/16] (narrow) %v3306_v3, 8 }
 0x442   :  { %2426 = vmatmul.msk.f32.gmra.mxu3 %vm86_vm0, %v621_v54 }
 0x443   :  { %2125 = vxpose.xlu1.b32.start [1/16] (narrow) %v1709_v30, 8 }
 0x445   :  { %v1721_v32 = vpop.f32.mrf.mxu3 }
 0x446   :  { %2076 = vxpose.xlu2.b32.end [16/16] (narrow) %v3266_v39, 8  ;;  %v623_v39 = vpop.trf.xlu2  ;;  %v1475_v50 = vpop.f32.mrf.mxu1 }
 0x448   :  { %2100 = vxpose.xlu0.b32.cont [8/16] (narrow) %v3311_v10, 8 }
 0x44a   :  { %2427 = vmatmul.msk.f32.gmra.mxu3 %vm86_vm0, %v622_v42 }
 0x44b   :  { %2126 = vxpose.xlu1.b32.cont [2/16] (narrow) %v1712_v55, 8 }
 0x44d   :  { %v1724_v34 = vpop.f32.mrf.mxu3 }
 0x44e   :  { %1965 = vxpose.xlu2.b32.start [1/16] (narrow) %v1469_v40, 8  ;;  %v624_v6 = vpop.trf.xlu2  ;;  %v1478_v4 = vpop.f32.mrf.mxu1 }
 0x450   :  { %2101 = vxpose.xlu0.b32.cont [9/16] (narrow) %v3316_v7, 8 }
 0x452   :  { %2428 = vmatmul.msk.f32.gmra.mxu3 %vm86_vm0, %v623_v39 }
 0x453   :  { %2127 = vxpose.xlu1.b32.cont [3/16] (narrow) %v1715_v27, 8 }
 0x455   :  { %v1727_v36 = vpop.f32.mrf.mxu3 }
 0x456   :  { %1966 = vxpose.xlu2.b32.cont [2/16] (narrow) %v1472_v45, 8  ;;  %v625_v17 = vpop.trf.xlu2 }
 0x458   :  { %2102 = vxpose.xlu0.b32.cont [10/16] (narrow) %v3321_v11, 8  ;;  %v3423_v11 = vld [vmem:[#allocation18_spill] sm:$0xff] }
 0x45a   :  { %2429 = vmatmul.msk.f32.gmra.mxu3 %vm86_vm0, %v624_v6 }
 0x45b   :  { %2128 = vxpose.xlu1.b32.cont [4/16] (narrow) %v1718_v59, 8 }
 0x45d   :  { %v1730_v38 = vpop.f32.mrf.mxu3 }
 0x45e   :  { %1967 = vxpose.xlu2.b32.cont [3/16] (narrow) %v1475_v50, 8  ;;  %v626_v1 = vpop.trf.xlu2 }
 0x460   :  { %2103 = vxpose.xlu0.b32.cont [11/16] (narrow) %v3326_v53, 8 }
 0x462   :  { %2430 = vmatmul.msk.f32.gmra.mxu3 %vm86_vm0, %v625_v17 }
 0x463   :  { %2129 = vxpose.xlu1.b32.cont [5/16] (narrow) %v1721_v32, 8 }
 0x465   :  { %v1733_v41 = vpop.f32.mrf.mxu3 }
 0x466   :  { %1968 = vxpose.xlu2.b32.cont [4/16] (narrow) %v1478_v4, 8  ;;  %v627_v5 = vpop.trf.xlu2 }
 0x467   :  { %v2045_v30 = vpop.trf.xlu1 }
 0x468   :  { %2104 = vxpose.xlu0.b32.cont [12/16] (narrow) %v3331_v49, 8  ;;  %2196 = vst [vmem:[#allocation8 + $0x1c] sm:$0xf] %v2045_v30 }
 0x46a   :  { %2431 = vmatmul.msk.f32.gmra.mxu3 %vm86_vm0, %v626_v1 }
 0x46b   :  { %2130 = vxpose.xlu1.b32.cont [6/16] (narrow) %v1724_v34, 8 }
 0x46d   :  { %v1736_v28 = vpop.f32.mrf.mxu3 }
 0x46e   :  { %1969 = vxpose.xlu2.b32.cont [5/16] (narrow) %v2904_v37, 8  ;;  %v628_v37 = vpop.trf.xlu2 }
 0x470   :  { %2105 = vxpose.xlu0.b32.cont [13/16] (narrow) %v3336_v15, 8 }
 0x472   :  { %2432 = vmatmul.msk.f32.gmra.mxu3 %vm86_vm0, %v627_v5 }
 0x473   :  { %2131 = vxpose.xlu1.b32.cont [7/16] (narrow) %v1727_v36, 8 }
 0x475   :  { %v1739_v61 = vpop.f32.mrf.mxu3 }
 0x476   :  { %1970 = vxpose.xlu2.b32.cont [6/16] (narrow) %v3417_v60, 8  ;;  %v629_v51 = vpop.trf.xlu2 }
 0x478   :  { %2106 = vxpose.xlu0.b32.cont [14/16] (narrow) %v3341_v62, 8 }
 0x47a   :  { %2433 = vmatmul.msk.f32.gmra.mxu3 %vm86_vm0, %v628_v37 }
 0x47b   :  { %2132 = vxpose.xlu1.b32.cont [8/16] (narrow) %v1730_v38, 8 }
 0x47d   :  { %v1742_v9 = vpop.f32.mrf.mxu3 }
 0x47e   :  { %1971 = vxpose.xlu2.b32.cont [7/16] (narrow) %v3418_v63, 8  ;;  %v630_v3 = vpop.trf.xlu2 }
 0x480   :  { %2107 = vxpose.xlu0.b32.cont [15/16] (narrow) %v3346_v33, 8 }
 0x482   :  { %2434 = vmatmul.msk.f32.gmra.mxu3 %vm86_vm0, %v629_v51 }
 0x483   :  { %2133 = vxpose.xlu1.b32.cont [9/16] (narrow) %v1733_v41, 8 }
 0x485   :  { %v1745_v31 = vpop.f32.mrf.mxu3 }
 0x486   :  { %1972 = vxpose.xlu2.b32.cont [8/16] (narrow) %v3419_v43, 8  ;;  %v631_v10 = vpop.trf.xlu2 }
 0x488   :  { %2108 = vxpose.xlu0.b32.end [16/16] (narrow) %v3352_v0, 8 }
 0x48a   :  { %2435 = vmatmul.msk.f32.gmra.mxu3 %vm86_vm0, %v630_v3 }
 0x48b   :  { %2134 = vxpose.xlu1.b32.cont [10/16] (narrow) %v1736_v28, 8 }
 0x48d   :  { %v1748_v18 = vpop.f32.mrf.mxu3 }
 0x48e   :  { %1973 = vxpose.xlu2.b32.cont [9/16] (narrow) %v3420_v46, 8  ;;  %v632_v7 = vpop.trf.xlu2 }
 0x492   :  { %2436 = vmatmul.msk.f32.gmra.mxu3 %vm86_vm0, %v631_v10 }
 0x493   :  { %2135 = vxpose.xlu1.b32.cont [11/16] (narrow) %v1739_v61, 8 }
 0x495   :  { %v1751_v58 = vpop.f32.mrf.mxu3 }
 0x496   :  { %1974 = vxpose.xlu2.b32.cont [10/16] (narrow) %v3421_v56, 8  ;;  %v1885_v15 = vpop.trf.xlu2 }
 0x497   :  { %2191 = vst [vmem:[#allocation8 + $0x8] sm:$0xf] %v1885_v15 }
 0x49a   :  { %2437 = vmatmul.msk.f32.gmra.mxu3 %vm86_vm0, %v632_v7 }
 0x49b   :  { %2136 = vxpose.xlu1.b32.cont [12/16] (narrow) %v1742_v9, 8 }
 0x49d   :  { %v1754_v2 = vpop.f32.mrf.mxu3 }
 0x49e   :  { %1975 = vxpose.xlu2.b32.cont [11/16] (narrow) %v3422_v13, 8  ;;  %v2077_v62 = vpop.trf.xlu2 }
 0x49f   :  { %2197 = vst [vmem:[#allocation8 + $0x20] sm:$0xf] %v2077_v62 }
 0x4a3   :  { %2137 = vxpose.xlu1.b32.cont [13/16] (narrow) %v1745_v31, 8 }
 0x4a5   :  { %v1757_v44 = vpop.f32.mrf.mxu3 }
 0x4a6   :  { %1976 = vxpose.xlu2.b32.cont [12/16] (narrow) %v2974_v35, 8 }
 0x4ab   :  { %2138 = vxpose.xlu1.b32.cont [14/16] (narrow) %v1748_v18, 8 }
 0x4ad   :  { %v1760_v16 = vpop.f32.mrf.mxu3 }
 0x4ae   :  { %1977 = vxpose.xlu2.b32.cont [13/16] (narrow) %v3423_v11, 8 }
 0x4b3   :  { %2139 = vxpose.xlu1.b32.cont [15/16] (narrow) %v1751_v58, 8 }
 0x4b4   :  { %v2109_v14 = vpop.trf.xlu0 }
 0x4b5   :  { %v1763_v47 = vpop.f32.mrf.mxu3  ;;  %2198 = vst [vmem:[#allocation8 + $0x24] sm:$0xf] %v2109_v14 }
 0x4b6   :  { %1978 = vxpose.xlu2.b32.cont [14/16] (narrow) %v2995_v57, 8 }
 0x4bb   :  { %2140 = vxpose.xlu1.b32.end [16/16] (narrow) %v1754_v2, 8 }
 0x4bd   :  { %v1766_v53 = vpop.f32.mrf.mxu3 }
 0x4be   :  { %1979 = vxpose.xlu2.b32.cont [15/16] (narrow) %v3006_v48, 8 }
 0x4c5   :  { %v1769_v23 = vpop.f32.mrf.mxu3 }
 0x4c6   :  { %1980 = vxpose.xlu2.b32.end [16/16] (narrow) %v3017_v8, 8 }
 0x4cd   :  { %v1772_v35 = vpop.f32.mrf.mxu3 }
 0x4ce   :  { %2157 = vxpose.xlu2.b32.start [1/16] (narrow) %v1757_v44, 8 }
 0x4d5   :  { %v1775_v12 = vpop.f32.mrf.mxu3 }
 0x4d6   :  { %2158 = vxpose.xlu2.b32.cont [2/16] (narrow) %v1760_v16, 8 }
 0x4dd   :  { %v1778_v49 = vpop.f32.mrf.mxu3 }
 0x4de   :  { %2159 = vxpose.xlu2.b32.cont [3/16] (narrow) %v1763_v47, 8 }
 0x4e5   :  { %v1781_v21 = vpop.f32.mrf.mxu3 }
 0x4e6   :  { %2160 = vxpose.xlu2.b32.cont [4/16] (narrow) %v1766_v53, 8 }
 0x4e7   :  { %v1981_v0 = vpop.trf.xlu2  ;;  %v2141_v27 = vpop.trf.xlu1 }
 0x4e8   :  { %2194 = vst [vmem:[#allocation8 + $0x14] sm:$0xf] %v1981_v0 }
 0x4e9   :  { %2199 = vst [vmem:[#allocation8 + $0x28] sm:$0xf] %v2141_v27 }
 0x4ed   :  { %v1784_v57 = vpop.f32.mrf.mxu3 }
 0x4ee   :  { %2161 = vxpose.xlu2.b32.cont [5/16] (narrow) %v1769_v23, 8 }
 0x4f5   :  { %v1787_v48 = vpop.f32.mrf.mxu3 }
 0x4f6   :  { %2162 = vxpose.xlu2.b32.cont [6/16] (narrow) %v1772_v35, 8 }
 0x4fd   :  { %v1790_v20 = vpop.f32.mrf.mxu3 }
 0x4fe   :  { %2163 = vxpose.xlu2.b32.cont [7/16] (narrow) %v1775_v12, 8 }
 0x505   :  { %v1793_v8 = vpop.f32.mrf.mxu3 }
 0x506   :  { %2164 = vxpose.xlu2.b32.cont [8/16] (narrow) %v1778_v49, 8 }
 0x50d   :  { %v1796_v33 = vpop.f32.mrf.mxu3 }
 0x50e   :  { %2165 = vxpose.xlu2.b32.cont [9/16] (narrow) %v1781_v21, 8 }
 0x515   :  { %v1799_v24 = vpop.f32.mrf.mxu3 }
 0x516   :  { %2166 = vxpose.xlu2.b32.cont [10/16] (narrow) %v1784_v57, 8 }
 0x51d   :  { %v1802_v55 = vpop.f32.mrf.mxu3 }
 0x51e   :  { %2167 = vxpose.xlu2.b32.cont [11/16] (narrow) %v1787_v48, 8 }
 0x526   :  { %2168 = vxpose.xlu2.b32.cont [12/16] (narrow) %v1790_v20, 8 }
 0x52e   :  { %2169 = vxpose.xlu2.b32.cont [13/16] (narrow) %v1793_v8, 8 }
 0x536   :  { %2170 = vxpose.xlu2.b32.cont [14/16] (narrow) %v1796_v33, 8 }
 0x53e   :  { %2171 = vxpose.xlu2.b32.cont [15/16] (narrow) %v1799_v24, 8 }
 0x546   :  { %2172 = vxpose.xlu2.b32.end [16/16] (narrow) %v1802_v55, 8 }
 0x567   :  { %v2173_v19 = vpop.trf.xlu2 }
 0x568   :  { %2200 = vst [vmem:[#allocation8 + $0x2c] sm:$0xf] %v2173_v19 }
 0x569   :  { %2213 = dma.vmem_to_hbm [thread:$0]  %s2206_s2, 768, %s2208_s30, [#allocation4], %s2558_s4, %s2558_s4, %s2559_s5  }
 0x56a   :  { %2550 = dma.done.wait [#allocation4], 768  }
 0x56b   :  { %2551 = vsyncadd [#allocation4], 4294966528 }
 0x56c   :  { %2218 = vsyncpa [#allocation3], 1 }
 0x56d   :  { %2219 = vsyncpa [#allocation6], 1 }
 0x56e   :  { %2220 = vsyncpa [#allocation4], 1 }

</bundles_post_ra>
